<compile_context>
chip_gen: v7x
topology: tpu7x:2x2x1
jax: 0.10.0
libtpu: 0.0.40
codegen_flags: <defaults>
</compile_context>

<pallas_src>
import functools
import math

import jax
import jax.numpy as jnp
from jax.experimental import pallas as pl
from jax.experimental.pallas import tpu as pltpu

D_MODEL = 128
N_HEADS = 4
HEAD_DIM = D_MODEL // N_HEADS
FF_DIM = 512
N_LAYERS = 2
LN_EPS = 1e-5


# --------------------- fused per-layer transformer kernel -------------------
def _clip_layer_kernel(x_ref, mask_ref,
                       ln1w_ref, ln1b_ref, wqkv_ref, bqkv_ref, wo_ref, bo_ref,
                       ln2w_ref, ln2b_ref, wfc1_ref, bfc1_ref, wfc2_ref,
                       bfc2_ref, lnfw_ref, lnfb_ref,
                       out_ref,
                       res_ref, attn_ref,
                       *, num_heads, head_dim, eps):
    l = pl.program_id(1)
    n_layers = pl.num_programs(1)
    d = res_ref.shape[1]

    # residual stream lives in VMEM scratch across the layer axis
    @pl.when(l == 0)
    def _():
        res_ref[...] = x_ref[0]

    x = res_ref[...]                                           # (S, D) f32

    def layernorm(v, w, b):
        mu = jnp.mean(v, axis=-1, keepdims=True)
        c = v - mu
        var = jnp.mean(c * c, axis=-1, keepdims=True)
        return c * jax.lax.rsqrt(var + eps) * w + b

    # ---------------- self-attention (pre-LN, causal + padding mask) -------
    h = layernorm(x, ln1w_ref[0], ln1b_ref[0])                 # (S, D)
    qkv = jnp.dot(h.astype(jnp.bfloat16), wqkv_ref[0],
                  preferred_element_type=jnp.float32) + bqkv_ref[0]  # (S, 3D)
    mask = mask_ref[0]                                         # (S, S) additive
    scale = 1.0 / math.sqrt(head_dim)
    for hh in range(num_heads):
        lo = hh * head_dim
        qs = qkv[:, lo:lo + head_dim]
        ks = qkv[:, d + lo:d + lo + head_dim]
        vs = qkv[:, 2 * d + lo:2 * d + lo + head_dim]
        s = jax.lax.dot_general(qs, ks, (((1,), (1,)), ((), ())),
                                preferred_element_type=jnp.float32) * scale
        s = s + mask
        s = s - jnp.max(s, axis=-1, keepdims=True)
        p = jnp.exp(s)
        p = p * pl.reciprocal(jnp.sum(p, axis=-1, keepdims=True), approx=True)
        attn_ref[:, lo:lo + head_dim] = jnp.dot(
            p, vs, preferred_element_type=jnp.float32)
    o = jnp.dot(attn_ref[...].astype(jnp.bfloat16), wo_ref[0],
                preferred_element_type=jnp.float32) + bo_ref[0]
    x = x + o

    # ---------------- MLP (quick_gelu, pre-LN) -----------------------------
    h2 = layernorm(x, ln2w_ref[0], ln2b_ref[0])
    f = jnp.dot(h2.astype(jnp.bfloat16), wfc1_ref[0],
                preferred_element_type=jnp.float32) + bfc1_ref[0]
    f = f * jax.nn.sigmoid(1.702 * f)                          # quick_gelu
    m = jnp.dot(f.astype(jnp.bfloat16), wfc2_ref[0],
                preferred_element_type=jnp.float32) + bfc2_ref[0]
    x = x + m
    res_ref[...] = x

    # ---------------- final LayerNorm + writeback at last layer ------------
    @pl.when(l == n_layers - 1)
    def _():
        out_ref[0] = layernorm(x, lnfw_ref[...], lnfb_ref[...]).astype(out_ref.dtype)


# --------------------------- host-side glue ---------------------------------
def clip_text_encode(input_ids, attention_mask, params,
                     *, num_heads=N_HEADS, eps=LN_EPS):
    """encode_prompt: token ids + mask -> last_hidden_state (B, S, D)."""
    B, S = input_ids.shape
    D = params["tok_emb"].shape[1]
    L = params["w_qkv"].shape[0]
    FF = params["w_fc1"].shape[2]
    head_dim = D // num_heads

    # token + positional embedding (trivial gather, kept as JAX glue)
    x = jnp.take(params["tok_emb"], input_ids, axis=0) + params["pos_emb"][None, :S]
    x = x.astype(jnp.float32)

    # additive attention mask: causal + key padding
    neg = jnp.float32(-1e9)
    causal = jnp.where(jnp.arange(S)[:, None] >= jnp.arange(S)[None, :],
                       jnp.float32(0.0), neg)                  # (S, S)
    pad = (1.0 - attention_mask.astype(jnp.float32)) * neg     # (B, S) keys
    mask = causal[None, :, :] + pad[:, None, :]                # (B, S, S)

    kern = functools.partial(_clip_layer_kernel, num_heads=num_heads,
                             head_dim=head_dim, eps=eps)

    def w_spec(shape):   # stacked per-layer weights, indexed by layer
        return pl.BlockSpec((1,) + shape, lambda b, l: (l, 0, 0))

    seq_spec = pl.BlockSpec((1, S, D), lambda b, l: (b, 0, 0))

    out = pl.pallas_call(
        kern,
        out_shape=jax.ShapeDtypeStruct((B, S, D), jnp.float32),
        grid_spec=pltpu.PrefetchScalarGridSpec(
            num_scalar_prefetch=0,
            grid=(B, L),
            in_specs=[
                seq_spec,                                          # x
                pl.BlockSpec((1, S, S), lambda b, l: (b, 0, 0)),   # mask
                w_spec((1, D)),                                    # ln1_w
                w_spec((1, D)),                                    # ln1_b
                w_spec((D, 3 * D)),                                # w_qkv
                w_spec((1, 3 * D)),                                # b_qkv
                w_spec((D, D)),                                    # w_o
                w_spec((1, D)),                                    # b_o
                w_spec((1, D)),                                    # ln2_w
                w_spec((1, D)),                                    # ln2_b
                w_spec((D, FF)),                                   # w_fc1
                w_spec((1, FF)),                                   # b_fc1
                w_spec((FF, D)),                                   # w_fc2
                w_spec((1, D)),                                    # b_fc2
                pl.BlockSpec((1, D), lambda b, l: (0, 0)),         # lnf_w
                pl.BlockSpec((1, D), lambda b, l: (0, 0)),         # lnf_b
            ],
            out_specs=seq_spec,
            scratch_shapes=[pltpu.VMEM((S, D), jnp.float32),       # residual
                            pltpu.VMEM((S, D), jnp.float32)],      # attn ctx
        ),
        compiler_params=pltpu.CompilerParams(
            dimension_semantics=("parallel", "arbitrary")),
    )(x, mask,
      params["ln1_w"], params["ln1_b"],
      params["w_qkv"].astype(jnp.bfloat16), params["b_qkv"],
      params["w_o"].astype(jnp.bfloat16), params["b_o"],
      params["ln2_w"], params["ln2_b"],
      params["w_fc1"].astype(jnp.bfloat16), params["b_fc1"],
      params["w_fc2"].astype(jnp.bfloat16), params["b_fc2"],
      params["lnf_w"], params["lnf_b"])
    return out


def tp_text_wrapper_forward(input_ids, attention_mask, params):
    # TODO(synk): PIL canvas paste, LLaVA Predictor.eval_model() (next_prompt
    # generation) and the HF tokenizer are host-side / external models with no
    # Pallas equivalent; the forward consumes pre-tokenized ids directly and
    # returns the text embeddings (last_hidden_state), like encode_prompt().
    return clip_text_encode(input_ids, attention_mask, params)


def init_params(key, *, vocab=256, max_pos=8, d=D_MODEL, n_layers=N_LAYERS,
                ff=FF_DIM):
    ks = jax.random.split(key, 6)
    s = 0.02
    rnd = lambda k, shape: jax.random.normal(k, shape, jnp.float32) * s
    return dict(
        tok_emb=rnd(ks[0], (vocab, d)),
        pos_emb=rnd(ks[1], (max_pos, d)),
        ln1_w=jnp.ones((n_layers, 1, d), jnp.float32),
        ln1_b=jnp.zeros((n_layers, 1, d), jnp.float32),
        w_qkv=rnd(ks[2], (n_layers, d, 3 * d)),
        b_qkv=jnp.zeros((n_layers, 1, 3 * d), jnp.float32),
        w_o=rnd(ks[3], (n_layers, d, d)),
        b_o=jnp.zeros((n_layers, 1, d), jnp.float32),
        ln2_w=jnp.ones((n_layers, 1, d), jnp.float32),
        ln2_b=jnp.zeros((n_layers, 1, d), jnp.float32),
        w_fc1=rnd(ks[4], (n_layers, d, ff)),
        b_fc1=jnp.zeros((n_layers, 1, ff), jnp.float32),
        w_fc2=rnd(ks[5], (n_layers, ff, d)),
        b_fc2=jnp.zeros((n_layers, 1, d), jnp.float32),
        lnf_w=jnp.ones((1, d), jnp.float32),
        lnf_b=jnp.zeros((1, d), jnp.float32),
    )


if __name__ == "__main__":
    key = jax.random.PRNGKey(0)
    k_ids, k_params = jax.random.split(key)

    B, S, VOCAB = 2, 8, 256
    params = init_params(k_params, vocab=VOCAB, max_pos=S)

    # TODO(synk): deterministic synthetic "tokenized next_prompt" stands in
    # for LLaVA + the HF tokenizer.
    input_ids = jax.random.randint(k_ids, (B, S), 1, VOCAB, dtype=jnp.int32)
    attention_mask = jnp.array([[1, 1, 1, 1, 1, 1, 1, 1],
                                [1, 1, 1, 1, 1, 0, 0, 0]], dtype=jnp.int32)

    text_embeddings = tp_text_wrapper_forward(input_ids, attention_mask, params)
    jax.block_until_ready(text_embeddings)

    assert text_embeddings.shape == (B, S, D_MODEL)
    assert text_embeddings.dtype == jnp.float32
    assert bool(jnp.all(jnp.isfinite(text_embeddings)))
    print("KERNEL_OK")
</pallas_src>

<mosaic_0001>
module attributes {stable_mosaic.version = 11 : i64} {
  func.func @_clip_layer_kernel(%arg0: i32, %arg1: i32, %arg2: memref<1x8x128xf32, #tpu.memory_space<vmem>>, %arg3: memref<1x8x8xf32, #tpu.memory_space<vmem>>, %arg4: memref<1x1x128xf32, #tpu.memory_space<vmem>>, %arg5: memref<1x1x128xf32, #tpu.memory_space<vmem>>, %arg6: memref<1x128x384xbf16, #tpu.memory_space<vmem>>, %arg7: memref<1x1x384xf32, #tpu.memory_space<vmem>>, %arg8: memref<1x128x128xbf16, #tpu.memory_space<vmem>>, %arg9: memref<1x1x128xf32, #tpu.memory_space<vmem>>, %arg10: memref<1x1x128xf32, #tpu.memory_space<vmem>>, %arg11: memref<1x1x128xf32, #tpu.memory_space<vmem>>, %arg12: memref<1x128x512xbf16, #tpu.memory_space<vmem>>, %arg13: memref<1x1x512xf32, #tpu.memory_space<vmem>>, %arg14: memref<1x512x128xbf16, #tpu.memory_space<vmem>>, %arg15: memref<1x1x128xf32, #tpu.memory_space<vmem>>, %arg16: memref<1x128xf32, #tpu.memory_space<vmem>>, %arg17: memref<1x128xf32, #tpu.memory_space<vmem>>, %arg18: memref<1x8x128xf32, #tpu.memory_space<vmem>>, %arg19: memref<8x128xf32, #tpu.memory_space<vmem>>, %arg20: memref<8x128xf32, #tpu.memory_space<vmem>>) attributes {dimension_semantics = [#tpu.dimension_semantics<parallel>, #tpu.dimension_semantics<arbitrary>], iteration_bounds = array<i64: 2, 2>, scalar_prefetch = 0 : i64, scratch_operands = 2 : i64, tpu.core_type = #tpu.core_type<tc>, window_params = [{transform_indices = @transform_0, window_bounds = array<i64: 1, 8, 128>}, {transform_indices = @transform_1, window_bounds = array<i64: 1, 8, 8>}, {transform_indices = @transform_2, window_bounds = array<i64: 1, 1, 128>}, {transform_indices = @transform_3, window_bounds = array<i64: 1, 1, 128>}, {transform_indices = @transform_4, window_bounds = array<i64: 1, 128, 384>}, {transform_indices = @transform_5, window_bounds = array<i64: 1, 1, 384>}, {transform_indices = @transform_6, window_bounds = array<i64: 1, 128, 128>}, {transform_indices = @transform_7, window_bounds = array<i64: 1, 1, 128>}, {transform_indices = @transform_8, window_bounds = array<i64: 1, 1, 128>}, {transform_indices = @transform_9, window_bounds = array<i64: 1, 1, 128>}, {transform_indices = @transform_10, window_bounds = array<i64: 1, 128, 512>}, {transform_indices = @transform_11, window_bounds = array<i64: 1, 1, 512>}, {transform_indices = @transform_12, window_bounds = array<i64: 1, 512, 128>}, {transform_indices = @transform_13, window_bounds = array<i64: 1, 1, 128>}, {pipeline_mode = #tpu.pipeline_mode<synchronous>, transform_indices = @transform_14, window_bounds = array<i64: 1, 128>}, {pipeline_mode = #tpu.pipeline_mode<synchronous>, transform_indices = @transform_15, window_bounds = array<i64: 1, 128>}, {transform_indices = @transform_16, window_bounds = array<i64: 1, 8, 128>}]} {
    %c0_i32 = arith.constant 0 : i32
    %0 = arith.cmpi eq, %arg1, %c0_i32 : i32
    %1 = arith.extui %0 : i1 to i32
    %c0_i32_0 = arith.constant 0 : i32
    %2 = arith.cmpi ne, %1, %c0_i32_0 : i32
    scf.if %2 {
      %c0_86 = arith.constant 0 : index
      %c0_87 = arith.constant 0 : index
      %c0_88 = arith.constant 0 : index
      %177 = vector.load %arg2[%c0_86, %c0_87, %c0_88] : memref<1x8x128xf32, #tpu.memory_space<vmem>>, vector<1x8x128xf32>
      %178 = vector.shape_cast %177 : vector<1x8x128xf32> to vector<8x128xf32>
      %c0_89 = arith.constant 0 : index
      %c0_90 = arith.constant 0 : index
      %179 = vector.load %arg19[%c0_89, %c0_90] : memref<8x128xf32, #tpu.memory_space<vmem>>, vector<8x128xf32>
      tpu.vector_store %arg19[%c0_89, %c0_90], %178 {strides = array<i32>} : memref<8x128xf32, #tpu.memory_space<vmem>>, vector<8x128xf32>,
    } else {
    }
    %c0 = arith.constant 0 : index
    %c0_1 = arith.constant 0 : index
    %3 = vector.load %arg19[%c0, %c0_1] : memref<8x128xf32, #tpu.memory_space<vmem>>, vector<8x128xf32>
    %c0_2 = arith.constant 0 : index
    %c0_3 = arith.constant 0 : index
    %c0_4 = arith.constant 0 : index
    %4 = vector.load %arg4[%c0_2, %c0_3, %c0_4] : memref<1x1x128xf32, #tpu.memory_space<vmem>>, vector<1x1x128xf32>
    %5 = vector.shape_cast %4 : vector<1x1x128xf32> to vector<1x128xf32>
    %c0_5 = arith.constant 0 : index
    %c0_6 = arith.constant 0 : index
    %c0_7 = arith.constant 0 : index
    %6 = vector.load %arg5[%c0_5, %c0_6, %c0_7] : memref<1x1x128xf32, #tpu.memory_space<vmem>>, vector<1x1x128xf32>
    %7 = vector.shape_cast %6 : vector<1x1x128xf32> to vector<1x128xf32>
    %cst = arith.constant dense<0.000000e+00> : vector<8xf32>
    %8 = vector.multi_reduction <add>, %3, %cst [1] : vector<8x128xf32> to vector<8xf32>
    %9 = vector.shape_cast %8 : vector<8xf32> to vector<8x1xf32>
    %cst_8 = arith.constant 1.280000e+02 : f32
    %10 = vector.broadcast %cst_8 : f32 to vector<8x1xf32>
    %11 = arith.divf %9, %10 : vector<8x1xf32>
    %12 = vector.broadcast %11 : vector<8x1xf32> to vector<8x128xf32>
    %13 = arith.subf %3, %12 : vector<8x128xf32>
    %14 = arith.mulf %13, %13 : vector<8x128xf32>
    %cst_9 = arith.constant dense<0.000000e+00> : vector<8xf32>
    %15 = vector.multi_reduction <add>, %14, %cst_9 [1] : vector<8x128xf32> to vector<8xf32>
    %16 = vector.shape_cast %15 : vector<8xf32> to vector<8x1xf32>
    %cst_10 = arith.constant 1.280000e+02 : f32
    %17 = vector.broadcast %cst_10 : f32 to vector<8x1xf32>
    %18 = arith.divf %16, %17 : vector<8x1xf32>
    %cst_11 = arith.constant 9.99999974E-6 : f32
    %19 = vector.broadcast %cst_11 : f32 to vector<8x1xf32>
    %20 = arith.addf %18, %19 : vector<8x1xf32>
    %21 = math.rsqrt %20 : vector<8x1xf32>
    %22 = vector.broadcast %21 : vector<8x1xf32> to vector<8x128xf32>
    %23 = arith.mulf %13, %22 : vector<8x128xf32>
    %24 = vector.broadcast %5 : vector<1x128xf32> to vector<8x128xf32>
    %25 = arith.mulf %23, %24 : vector<8x128xf32>
    %26 = vector.broadcast %7 : vector<1x128xf32> to vector<8x128xf32>
    %27 = arith.addf %25, %26 : vector<8x128xf32>
    %28 = arith.truncf %27 : vector<8x128xf32> to vector<8x128xbf16>
    %c0_12 = arith.constant 0 : index
    %c0_13 = arith.constant 0 : index
    %c0_14 = arith.constant 0 : index
    %29 = vector.load %arg6[%c0_12, %c0_13, %c0_14] : memref<1x128x384xbf16, #tpu.memory_space<vmem>>, vector<1x128x384xbf16>
    %30 = vector.shape_cast %29 : vector<1x128x384xbf16> to vector<128x384xbf16>
    %cst_15 = arith.constant dense<0.000000e+00> : vector<8x384xf32>
    %31 = tpu.matmul %28, %30, %cst_15 {dimension_numbers = #tpu.dot_dimension_numbers<[1], [0], [0], [1], [0, 0, 1, 1], [], []>} : vector<8x128xbf16>, vector<128x384xbf16>, vector<8x384xf32> -> vector<8x384xf32>
    %c0_16 = arith.constant 0 : index
    %c0_17 = arith.constant 0 : index
    %c0_18 = arith.constant 0 : index
    %32 = vector.load %arg7[%c0_16, %c0_17, %c0_18] : memref<1x1x384xf32, #tpu.memory_space<vmem>>, vector<1x1x384xf32>
    %33 = vector.shape_cast %32 : vector<1x1x384xf32> to vector<1x384xf32>
    %34 = vector.broadcast %33 : vector<1x384xf32> to vector<8x384xf32>
    %35 = arith.addf %31, %34 : vector<8x384xf32>
    %c0_19 = arith.constant 0 : index
    %c0_20 = arith.constant 0 : index
    %c0_21 = arith.constant 0 : index
    %36 = vector.load %arg3[%c0_19, %c0_20, %c0_21] : memref<1x8x8xf32, #tpu.memory_space<vmem>>, vector<1x8x8xf32>
    %37 = vector.shape_cast %36 : vector<1x8x8xf32> to vector<8x8xf32>
    %38 = vector.extract_strided_slice %35 {offsets = [0, 0], sizes = [8, 32], strides = [1, 1]} : vector<8x384xf32> to vector<8x32xf32>
    %39 = vector.extract_strided_slice %35 {offsets = [0, 128], sizes = [8, 32], strides = [1, 1]} : vector<8x384xf32> to vector<8x32xf32>
    %40 = vector.extract_strided_slice %35 {offsets = [0, 256], sizes = [8, 32], strides = [1, 1]} : vector<8x384xf32> to vector<8x32xf32>
    %cst_22 = arith.constant dense<0.000000e+00> : vector<8x8xf32>
    %41 = tpu.matmul %38, %39, %cst_22 {dimension_numbers = #tpu.dot_dimension_numbers<[1], [1], [0], [0], [0, 0, 1, 0], [], []>} : vector<8x32xf32>, vector<8x32xf32>, vector<8x8xf32> -> vector<8x8xf32>
    %cst_23 = arith.constant 0.176776692 : f32
    %42 = vector.broadcast %cst_23 : f32 to vector<8x8xf32>
    %43 = arith.mulf %41, %42 : vector<8x8xf32>
    %44 = arith.addf %43, %37 : vector<8x8xf32>
    %cst_24 = arith.constant dense<0xFF800000> : vector<8xf32>
    %45 = vector.multi_reduction <maximumf>, %44, %cst_24 [1] : vector<8x8xf32> to vector<8xf32>
    %46 = vector.shape_cast %45 : vector<8xf32> to vector<8x1xf32>
    %47 = vector.broadcast %46 : vector<8x1xf32> to vector<8x8xf32>
    %48 = arith.subf %44, %47 : vector<8x8xf32>
    %49 = math.exp %48 : vector<8x8xf32>
    %cst_25 = arith.constant dense<0.000000e+00> : vector<8xf32>
    %50 = vector.multi_reduction <add>, %49, %cst_25 [1] : vector<8x8xf32> to vector<8xf32>
    %51 = vector.shape_cast %50 : vector<8xf32> to vector<8x1xf32>
    %52 = tpu.reciprocal %51 {approx = true} : vector<8x1xf32> -> vector<8x1xf32>
    %53 = vector.broadcast %52 : vector<8x1xf32> to vector<8x8xf32>
    %54 = arith.mulf %49, %53 : vector<8x8xf32>
    %cst_26 = arith.constant dense<0.000000e+00> : vector<8x32xf32>
    %55 = tpu.matmul %54, %40, %cst_26 {dimension_numbers = #tpu.dot_dimension_numbers<[1], [0], [0], [1], [0, 0, 1, 1], [], []>} : vector<8x8xf32>, vector<8x32xf32>, vector<8x32xf32> -> vector<8x32xf32>
    %c0_27 = arith.constant 0 : index
    %c0_28 = arith.constant 0 : index
    %56 = vector.load %arg20[%c0_27, %c0_28] : memref<8x128xf32, #tpu.memory_space<vmem>>, vector<8x32xf32>
    tpu.vector_store %arg20[%c0_27, %c0_28], %55 {strides = array<i32>} : memref<8x128xf32, #tpu.memory_space<vmem>>, vector<8x32xf32>,
    %57 = vector.extract_strided_slice %35 {offsets = [0, 32], sizes = [8, 32], strides = [1, 1]} : vector<8x384xf32> to vector<8x32xf32>
    %58 = vector.extract_strided_slice %35 {offsets = [0, 160], sizes = [8, 32], strides = [1, 1]} : vector<8x384xf32> to vector<8x32xf32>
    %59 = vector.extract_strided_slice %35 {offsets = [0, 288], sizes = [8, 32], strides = [1, 1]} : vector<8x384xf32> to vector<8x32xf32>
    %cst_29 = arith.constant dense<0.000000e+00> : vector<8x8xf32>
    %60 = tpu.matmul %57, %58, %cst_29 {dimension_numbers = #tpu.dot_dimension_numbers<[1], [1], [0], [0], [0, 0, 1, 0], [], []>} : vector<8x32xf32>, vector<8x32xf32>, vector<8x8xf32> -> vector<8x8xf32>
    %cst_30 = arith.constant 0.176776692 : f32
    %61 = vector.broadcast %cst_30 : f32 to vector<8x8xf32>
    %62 = arith.mulf %60, %61 : vector<8x8xf32>
    %63 = arith.addf %62, %37 : vector<8x8xf32>
    %cst_31 = arith.constant dense<0xFF800000> : vector<8xf32>
    %64 = vector.multi_reduction <maximumf>, %63, %cst_31 [1] : vector<8x8xf32> to vector<8xf32>
    %65 = vector.shape_cast %64 : vector<8xf32> to vector<8x1xf32>
    %66 = vector.broadcast %65 : vector<8x1xf32> to vector<8x8xf32>
    %67 = arith.subf %63, %66 : vector<8x8xf32>
    %68 = math.exp %67 : vector<8x8xf32>
    %cst_32 = arith.constant dense<0.000000e+00> : vector<8xf32>
    %69 = vector.multi_reduction <add>, %68, %cst_32 [1] : vector<8x8xf32> to vector<8xf32>
    %70 = vector.shape_cast %69 : vector<8xf32> to vector<8x1xf32>
    %71 = tpu.reciprocal %70 {approx = true} : vector<8x1xf32> -> vector<8x1xf32>
    %72 = vector.broadcast %71 : vector<8x1xf32> to vector<8x8xf32>
    %73 = arith.mulf %68, %72 : vector<8x8xf32>
    %cst_33 = arith.constant dense<0.000000e+00> : vector<8x32xf32>
    %74 = tpu.matmul %73, %59, %cst_33 {dimension_numbers = #tpu.dot_dimension_numbers<[1], [0], [0], [1], [0, 0, 1, 1], [], []>} : vector<8x8xf32>, vector<8x32xf32>, vector<8x32xf32> -> vector<8x32xf32>
    %c0_34 = arith.constant 0 : index
    %c32 = arith.constant 32 : index
    %75 = vector.load %arg20[%c0_34, %c32] : memref<8x128xf32, #tpu.memory_space<vmem>>, vector<8x32xf32>
    tpu.vector_store %arg20[%c0_34, %c32], %74 {strides = array<i32>} : memref<8x128xf32, #tpu.memory_space<vmem>>, vector<8x32xf32>,
    %76 = vector.extract_strided_slice %35 {offsets = [0, 64], sizes = [8, 32], strides = [1, 1]} : vector<8x384xf32> to vector<8x32xf32>
    %77 = vector.extract_strided_slice %35 {offsets = [0, 192], sizes = [8, 32], strides = [1, 1]} : vector<8x384xf32> to vector<8x32xf32>
    %78 = vector.extract_strided_slice %35 {offsets = [0, 320], sizes = [8, 32], strides = [1, 1]} : vector<8x384xf32> to vector<8x32xf32>
    %cst_35 = arith.constant dense<0.000000e+00> : vector<8x8xf32>
    %79 = tpu.matmul %76, %77, %cst_35 {dimension_numbers = #tpu.dot_dimension_numbers<[1], [1], [0], [0], [0, 0, 1, 0], [], []>} : vector<8x32xf32>, vector<8x32xf32>, vector<8x8xf32> -> vector<8x8xf32>
    %cst_36 = arith.constant 0.176776692 : f32
    %80 = vector.broadcast %cst_36 : f32 to vector<8x8xf32>
    %81 = arith.mulf %79, %80 : vector<8x8xf32>
    %82 = arith.addf %81, %37 : vector<8x8xf32>
    %cst_37 = arith.constant dense<0xFF800000> : vector<8xf32>
    %83 = vector.multi_reduction <maximumf>, %82, %cst_37 [1] : vector<8x8xf32> to vector<8xf32>
    %84 = vector.shape_cast %83 : vector<8xf32> to vector<8x1xf32>
    %85 = vector.broadcast %84 : vector<8x1xf32> to vector<8x8xf32>
    %86 = arith.subf %82, %85 : vector<8x8xf32>
    %87 = math.exp %86 : vector<8x8xf32>
    %cst_38 = arith.constant dense<0.000000e+00> : vector<8xf32>
    %88 = vector.multi_reduction <add>, %87, %cst_38 [1] : vector<8x8xf32> to vector<8xf32>
    %89 = vector.shape_cast %88 : vector<8xf32> to vector<8x1xf32>
    %90 = tpu.reciprocal %89 {approx = true} : vector<8x1xf32> -> vector<8x1xf32>
    %91 = vector.broadcast %90 : vector<8x1xf32> to vector<8x8xf32>
    %92 = arith.mulf %87, %91 : vector<8x8xf32>
    %cst_39 = arith.constant dense<0.000000e+00> : vector<8x32xf32>
    %93 = tpu.matmul %92, %78, %cst_39 {dimension_numbers = #tpu.dot_dimension_numbers<[1], [0], [0], [1], [0, 0, 1, 1], [], []>} : vector<8x8xf32>, vector<8x32xf32>, vector<8x32xf32> -> vector<8x32xf32>
    %c0_40 = arith.constant 0 : index
    %c64 = arith.constant 64 : index
    %94 = vector.load %arg20[%c0_40, %c64] : memref<8x128xf32, #tpu.memory_space<vmem>>, vector<8x32xf32>
    tpu.vector_store %arg20[%c0_40, %c64], %93 {strides = array<i32>} : memref<8x128xf32, #tpu.memory_space<vmem>>, vector<8x32xf32>,
    %95 = vector.extract_strided_slice %35 {offsets = [0, 96], sizes = [8, 32], strides = [1, 1]} : vector<8x384xf32> to vector<8x32xf32>
    %96 = vector.extract_strided_slice %35 {offsets = [0, 224], sizes = [8, 32], strides = [1, 1]} : vector<8x384xf32> to vector<8x32xf32>
    %97 = vector.extract_strided_slice %35 {offsets = [0, 352], sizes = [8, 32], strides = [1, 1]} : vector<8x384xf32> to vector<8x32xf32>
    %cst_41 = arith.constant dense<0.000000e+00> : vector<8x8xf32>
    %98 = tpu.matmul %95, %96, %cst_41 {dimension_numbers = #tpu.dot_dimension_numbers<[1], [1], [0], [0], [0, 0, 1, 0], [], []>} : vector<8x32xf32>, vector<8x32xf32>, vector<8x8xf32> -> vector<8x8xf32>
    %cst_42 = arith.constant 0.176776692 : f32
    %99 = vector.broadcast %cst_42 : f32 to vector<8x8xf32>
    %100 = arith.mulf %98, %99 : vector<8x8xf32>
    %101 = arith.addf %100, %37 : vector<8x8xf32>
    %cst_43 = arith.constant dense<0xFF800000> : vector<8xf32>
    %102 = vector.multi_reduction <maximumf>, %101, %cst_43 [1] : vector<8x8xf32> to vector<8xf32>
    %103 = vector.shape_cast %102 : vector<8xf32> to vector<8x1xf32>
    %104 = vector.broadcast %103 : vector<8x1xf32> to vector<8x8xf32>
    %105 = arith.subf %101, %104 : vector<8x8xf32>
    %106 = math.exp %105 : vector<8x8xf32>
    %cst_44 = arith.constant dense<0.000000e+00> : vector<8xf32>
    %107 = vector.multi_reduction <add>, %106, %cst_44 [1] : vector<8x8xf32> to vector<8xf32>
    %108 = vector.shape_cast %107 : vector<8xf32> to vector<8x1xf32>
    %109 = tpu.reciprocal %108 {approx = true} : vector<8x1xf32> -> vector<8x1xf32>
    %110 = vector.broadcast %109 : vector<8x1xf32> to vector<8x8xf32>
    %111 = arith.mulf %106, %110 : vector<8x8xf32>
    %cst_45 = arith.constant dense<0.000000e+00> : vector<8x32xf32>
    %112 = tpu.matmul %111, %97, %cst_45 {dimension_numbers = #tpu.dot_dimension_numbers<[1], [0], [0], [1], [0, 0, 1, 1], [], []>} : vector<8x8xf32>, vector<8x32xf32>, vector<8x32xf32> -> vector<8x32xf32>
    %c0_46 = arith.constant 0 : index
    %c96 = arith.constant 96 : index
    %113 = vector.load %arg20[%c0_46, %c96] : memref<8x128xf32, #tpu.memory_space<vmem>>, vector<8x32xf32>
    tpu.vector_store %arg20[%c0_46, %c96], %112 {strides = array<i32>} : memref<8x128xf32, #tpu.memory_space<vmem>>, vector<8x32xf32>,
    %c0_47 = arith.constant 0 : index
    %c0_48 = arith.constant 0 : index
    %114 = vector.load %arg20[%c0_47, %c0_48] : memref<8x128xf32, #tpu.memory_space<vmem>>, vector<8x128xf32>
    %115 = arith.truncf %114 : vector<8x128xf32> to vector<8x128xbf16>
    %c0_49 = arith.constant 0 : index
    %c0_50 = arith.constant 0 : index
    %c0_51 = arith.constant 0 : index
    %116 = vector.load %arg8[%c0_49, %c0_50, %c0_51] : memref<1x128x128xbf16, #tpu.memory_space<vmem>>, vector<1x128x128xbf16>
    %117 = vector.shape_cast %116 : vector<1x128x128xbf16> to vector<128x128xbf16>
    %cst_52 = arith.constant dense<0.000000e+00> : vector<8x128xf32>
    %118 = tpu.matmul %115, %117, %cst_52 {dimension_numbers = #tpu.dot_dimension_numbers<[1], [0], [0], [1], [0, 0, 1, 1], [], []>} : vector<8x128xbf16>, vector<128x128xbf16>, vector<8x128xf32> -> vector<8x128xf32>
    %c0_53 = arith.constant 0 : index
    %c0_54 = arith.constant 0 : index
    %c0_55 = arith.constant 0 : index
    %119 = vector.load %arg9[%c0_53, %c0_54, %c0_55] : memref<1x1x128xf32, #tpu.memory_space<vmem>>, vector<1x1x128xf32>
    %120 = vector.shape_cast %119 : vector<1x1x128xf32> to vector<1x128xf32>
    %121 = vector.broadcast %120 : vector<1x128xf32> to vector<8x128xf32>
    %122 = arith.addf %118, %121 : vector<8x128xf32>
    %123 = arith.addf %3, %122 : vector<8x128xf32>
    %c0_56 = arith.constant 0 : index
    %c0_57 = arith.constant 0 : index
    %c0_58 = arith.constant 0 : index
    %124 = vector.load %arg10[%c0_56, %c0_57, %c0_58] : memref<1x1x128xf32, #tpu.memory_space<vmem>>, vector<1x1x128xf32>
    %125 = vector.shape_cast %124 : vector<1x1x128xf32> to vector<1x128xf32>
    %c0_59 = arith.constant 0 : index
    %c0_60 = arith.constant 0 : index
    %c0_61 = arith.constant 0 : index
    %126 = vector.load %arg11[%c0_59, %c0_60, %c0_61] : memref<1x1x128xf32, #tpu.memory_space<vmem>>, vector<1x1x128xf32>
    %127 = vector.shape_cast %126 : vector<1x1x128xf32> to vector<1x128xf32>
    %cst_62 = arith.constant dense<0.000000e+00> : vector<8xf32>
    %128 = vector.multi_reduction <add>, %123, %cst_62 [1] : vector<8x128xf32> to vector<8xf32>
    %129 = vector.shape_cast %128 : vector<8xf32> to vector<8x1xf32>
    %cst_63 = arith.constant 1.280000e+02 : f32
    %130 = vector.broadcast %cst_63 : f32 to vector<8x1xf32>
    %131 = arith.divf %129, %130 : vector<8x1xf32>
    %132 = vector.broadcast %131 : vector<8x1xf32> to vector<8x128xf32>
    %133 = arith.subf %123, %132 : vector<8x128xf32>
    %134 = arith.mulf %133, %133 : vector<8x128xf32>
    %cst_64 = arith.constant dense<0.000000e+00> : vector<8xf32>
    %135 = vector.multi_reduction <add>, %134, %cst_64 [1] : vector<8x128xf32> to vector<8xf32>
    %136 = vector.shape_cast %135 : vector<8xf32> to vector<8x1xf32>
    %cst_65 = arith.constant 1.280000e+02 : f32
    %137 = vector.broadcast %cst_65 : f32 to vector<8x1xf32>
    %138 = arith.divf %136, %137 : vector<8x1xf32>
    %cst_66 = arith.constant 9.99999974E-6 : f32
    %139 = vector.broadcast %cst_66 : f32 to vector<8x1xf32>
    %140 = arith.addf %138, %139 : vector<8x1xf32>
    %141 = math.rsqrt %140 : vector<8x1xf32>
    %142 = vector.broadcast %141 : vector<8x1xf32> to vector<8x128xf32>
    %143 = arith.mulf %133, %142 : vector<8x128xf32>
    %144 = vector.broadcast %125 : vector<1x128xf32> to vector<8x128xf32>
    %145 = arith.mulf %143, %144 : vector<8x128xf32>
    %146 = vector.broadcast %127 : vector<1x128xf32> to vector<8x128xf32>
    %147 = arith.addf %145, %146 : vector<8x128xf32>
    %148 = arith.truncf %147 : vector<8x128xf32> to vector<8x128xbf16>
    %c0_67 = arith.constant 0 : index
    %c0_68 = arith.constant 0 : index
    %c0_69 = arith.constant 0 : index
    %149 = vector.load %arg12[%c0_67, %c0_68, %c0_69] : memref<1x128x512xbf16, #tpu.memory_space<vmem>>, vector<1x128x512xbf16>
    %150 = vector.shape_cast %149 : vector<1x128x512xbf16> to vector<128x512xbf16>
    %cst_70 = arith.constant dense<0.000000e+00> : vector<8x512xf32>
    %151 = tpu.matmul %148, %150, %cst_70 {dimension_numbers = #tpu.dot_dimension_numbers<[1], [0], [0], [1], [0, 0, 1, 1], [], []>} : vector<8x128xbf16>, vector<128x512xbf16>, vector<8x512xf32> -> vector<8x512xf32>
    %c0_71 = arith.constant 0 : index
    %c0_72 = arith.constant 0 : index
    %c0_73 = arith.constant 0 : index
    %152 = vector.load %arg13[%c0_71, %c0_72, %c0_73] : memref<1x1x512xf32, #tpu.memory_space<vmem>>, vector<1x1x512xf32>
    %153 = vector.shape_cast %152 : vector<1x1x512xf32> to vector<1x512xf32>
    %154 = vector.broadcast %153 : vector<1x512xf32> to vector<8x512xf32>
    %155 = arith.addf %151, %154 : vector<8x512xf32>
    %cst_74 = arith.constant 1.702000e+00 : f32
    %156 = vector.broadcast %cst_74 : f32 to vector<8x512xf32>
    %157 = arith.mulf %156, %155 : vector<8x512xf32>
    %158 = arith.negf %157 : vector<8x512xf32>
    %159 = math.exp %158 : vector<8x512xf32>
    %cst_75 = arith.constant 1.000000e+00 : f32
    %160 = vector.broadcast %cst_75 : f32 to vector<8x512xf32>
    %161 = arith.addf %160, %159 : vector<8x512xf32>
    %162 = arith.divf %160, %161 : vector<8x512xf32>
    %163 = arith.mulf %155, %162 : vector<8x512xf32>
    %164 = arith.truncf %163 : vector<8x512xf32> to vector<8x512xbf16>
    %c0_76 = arith.constant 0 : index
    %c0_77 = arith.constant 0 : index
    %c0_78 = arith.constant 0 : index
    %165 = vector.load %arg14[%c0_76, %c0_77, %c0_78] : memref<1x512x128xbf16, #tpu.memory_space<vmem>>, vector<1x512x128xbf16>
    %166 = vector.shape_cast %165 : vector<1x512x128xbf16> to vector<512x128xbf16>
    %cst_79 = arith.constant dense<0.000000e+00> : vector<8x128xf32>
    %167 = tpu.matmul %164, %166, %cst_79 {dimension_numbers = #tpu.dot_dimension_numbers<[1], [0], [0], [1], [0, 0, 1, 1], [], []>} : vector<8x512xbf16>, vector<512x128xbf16>, vector<8x128xf32> -> vector<8x128xf32>
    %c0_80 = arith.constant 0 : index
    %c0_81 = arith.constant 0 : index
    %c0_82 = arith.constant 0 : index
    %168 = vector.load %arg15[%c0_80, %c0_81, %c0_82] : memref<1x1x128xf32, #tpu.memory_space<vmem>>, vector<1x1x128xf32>
    %169 = vector.shape_cast %168 : vector<1x1x128xf32> to vector<1x128xf32>
    %170 = vector.broadcast %169 : vector<1x128xf32> to vector<8x128xf32>
    %171 = arith.addf %167, %170 : vector<8x128xf32>
    %172 = arith.addf %123, %171 : vector<8x128xf32>
    %c0_83 = arith.constant 0 : index
    %c0_84 = arith.constant 0 : index
    %173 = vector.load %arg19[%c0_83, %c0_84] : memref<8x128xf32, #tpu.memory_space<vmem>>, vector<8x128xf32>
    tpu.vector_store %arg19[%c0_83, %c0_84], %172 {strides = array<i32>} : memref<8x128xf32, #tpu.memory_space<vmem>>, vector<8x128xf32>,
    %c1_i32 = arith.constant 1 : i32
    %174 = arith.cmpi eq, %arg1, %c1_i32 : i32
    %175 = arith.extui %174 : i1 to i32
    %c0_i32_85 = arith.constant 0 : i32
    %176 = arith.cmpi ne, %175, %c0_i32_85 : i32
    scf.if %176 {
      %c0_86 = arith.constant 0 : index
      %c0_87 = arith.constant 0 : index
      %177 = vector.load %arg16[%c0_86, %c0_87] : memref<1x128xf32, #tpu.memory_space<vmem>>, vector<1x128xf32>
      %c0_88 = arith.constant 0 : index
      %c0_89 = arith.constant 0 : index
      %178 = vector.load %arg17[%c0_88, %c0_89] : memref<1x128xf32, #tpu.memory_space<vmem>>, vector<1x128xf32>
      %cst_90 = arith.constant dense<0.000000e+00> : vector<8xf32>
      %179 = vector.multi_reduction <add>, %172, %cst_90 [1] : vector<8x128xf32> to vector<8xf32>
      %180 = vector.shape_cast %179 : vector<8xf32> to vector<8x1xf32>
      %cst_91 = arith.constant 1.280000e+02 : f32
      %181 = vector.broadcast %cst_91 : f32 to vector<8x1xf32>
      %182 = arith.divf %180, %181 : vector<8x1xf32>
      %183 = vector.broadcast %182 : vector<8x1xf32> to vector<8x128xf32>
      %184 = arith.subf %172, %183 : vector<8x128xf32>
      %185 = arith.mulf %184, %184 : vector<8x128xf32>
      %cst_92 = arith.constant dense<0.000000e+00> : vector<8xf32>
      %186 = vector.multi_reduction <add>, %185, %cst_92 [1] : vector<8x128xf32> to vector<8xf32>
      %187 = vector.shape_cast %186 : vector<8xf32> to vector<8x1xf32>
      %cst_93 = arith.constant 1.280000e+02 : f32
      %188 = vector.broadcast %cst_93 : f32 to vector<8x1xf32>
      %189 = arith.divf %187, %188 : vector<8x1xf32>
      %cst_94 = arith.constant 9.99999974E-6 : f32
      %190 = vector.broadcast %cst_94 : f32 to vector<8x1xf32>
      %191 = arith.addf %189, %190 : vector<8x1xf32>
      %192 = math.rsqrt %191 : vector<8x1xf32>
      %193 = vector.broadcast %192 : vector<8x1xf32> to vector<8x128xf32>
      %194 = arith.mulf %184, %193 : vector<8x128xf32>
      %195 = vector.broadcast %177 : vector<1x128xf32> to vector<8x128xf32>
      %196 = arith.mulf %194, %195 : vector<8x128xf32>
      %197 = vector.broadcast %178 : vector<1x128xf32> to vector<8x128xf32>
      %198 = arith.addf %196, %197 : vector<8x128xf32>
      %c0_95 = arith.constant 0 : index
      %c0_96 = arith.constant 0 : index
      %c0_97 = arith.constant 0 : index
      %199 = vector.load %arg18[%c0_95, %c0_96, %c0_97] : memref<1x8x128xf32, #tpu.memory_space<vmem>>, vector<1x8x128xf32>
      %200 = vector.shape_cast %199 : vector<1x8x128xf32> to vector<8x128xf32>
      %201 = vector.shape_cast %198 : vector<8x128xf32> to vector<1x8x128xf32>
      tpu.vector_store %arg18[%c0_95, %c0_96, %c0_97], %201 {strides = array<i32>} : memref<1x8x128xf32, #tpu.memory_space<vmem>>, vector<1x8x128xf32>,
    } else {
    }
    return
  }
  func.func @transform_0(%arg0: i32, %arg1: i32) -> (i32, i32, i32) {
    %c0_i32 = arith.constant 0 : i32
    %c0_i32_0 = arith.constant 0 : i32
    %c0_i32_1 = arith.constant 0 : i32
    return %arg0, %c0_i32, %c0_i32_0 : i32, i32, i32
  }
  func.func @transform_1(%arg0: i32, %arg1: i32) -> (i32, i32, i32) {
    %c0_i32 = arith.constant 0 : i32
    %c0_i32_0 = arith.constant 0 : i32
    %c0_i32_1 = arith.constant 0 : i32
    return %arg0, %c0_i32, %c0_i32_0 : i32, i32, i32
  }
  func.func @transform_2(%arg0: i32, %arg1: i32) -> (i32, i32, i32) {
    %c0_i32 = arith.constant 0 : i32
    %c0_i32_0 = arith.constant 0 : i32
    %c0_i32_1 = arith.constant 0 : i32
    return %arg1, %c0_i32, %c0_i32_0 : i32, i32, i32
  }
  func.func @transform_3(%arg0: i32, %arg1: i32) -> (i32, i32, i32) {
    %c0_i32 = arith.constant 0 : i32
    %c0_i32_0 = arith.constant 0 : i32
    %c0_i32_1 = arith.constant 0 : i32
    return %arg1, %c0_i32, %c0_i32_0 : i32, i32, i32
  }
  func.func @transform_4(%arg0: i32, %arg1: i32) -> (i32, i32, i32) {
    %c0_i32 = arith.constant 0 : i32
    %c0_i32_0 = arith.constant 0 : i32
    %c0_i32_1 = arith.constant 0 : i32
    return %arg1, %c0_i32, %c0_i32_0 : i32, i32, i32
  }
  func.func @transform_5(%arg0: i32, %arg1: i32) -> (i32, i32, i32) {
    %c0_i32 = arith.constant 0 : i32
    %c0_i32_0 = arith.constant 0 : i32
    %c0_i32_1 = arith.constant 0 : i32
    return %arg1, %c0_i32, %c0_i32_0 : i32, i32, i32
  }
  func.func @transform_6(%arg0: i32, %arg1: i32) -> (i32, i32, i32) {
    %c0_i32 = arith.constant 0 : i32
    %c0_i32_0 = arith.constant 0 : i32
    %c0_i32_1 = arith.constant 0 : i32
    return %arg1, %c0_i32, %c0_i32_0 : i32, i32, i32
  }
  func.func @transform_7(%arg0: i32, %arg1: i32) -> (i32, i32, i32) {
    %c0_i32 = arith.constant 0 : i32
    %c0_i32_0 = arith.constant 0 : i32
    %c0_i32_1 = arith.constant 0 : i32
    return %arg1, %c0_i32, %c0_i32_0 : i32, i32, i32
  }
  func.func @transform_8(%arg0: i32, %arg1: i32) -> (i32, i32, i32) {
    %c0_i32 = arith.constant 0 : i32
    %c0_i32_0 = arith.constant 0 : i32
    %c0_i32_1 = arith.constant 0 : i32
    return %arg1, %c0_i32, %c0_i32_0 : i32, i32, i32
  }
  func.func @transform_9(%arg0: i32, %arg1: i32) -> (i32, i32, i32) {
    %c0_i32 = arith.constant 0 : i32
    %c0_i32_0 = arith.constant 0 : i32
    %c0_i32_1 = arith.constant 0 : i32
    return %arg1, %c0_i32, %c0_i32_0 : i32, i32, i32
  }
  func.func @transform_10(%arg0: i32, %arg1: i32) -> (i32, i32, i32) {
    %c0_i32 = arith.constant 0 : i32
    %c0_i32_0 = arith.constant 0 : i32
    %c0_i32_1 = arith.constant 0 : i32
    return %arg1, %c0_i32, %c0_i32_0 : i32, i32, i32
  }
  func.func @transform_11(%arg0: i32, %arg1: i32) -> (i32, i32, i32) {
    %c0_i32 = arith.constant 0 : i32
    %c0_i32_0 = arith.constant 0 : i32
    %c0_i32_1 = arith.constant 0 : i32
    return %arg1, %c0_i32, %c0_i32_0 : i32, i32, i32
  }
  func.func @transform_12(%arg0: i32, %arg1: i32) -> (i32, i32, i32) {
    %c0_i32 = arith.constant 0 : i32
    %c0_i32_0 = arith.constant 0 : i32
    %c0_i32_1 = arith.constant 0 : i32
    return %arg1, %c0_i32, %c0_i32_0 : i32, i32, i32
  }
  func.func @transform_13(%arg0: i32, %arg1: i32) -> (i32, i32, i32) {
    %c0_i32 = arith.constant 0 : i32
    %c0_i32_0 = arith.constant 0 : i32
    %c0_i32_1 = arith.constant 0 : i32
    return %arg1, %c0_i32, %c0_i32_0 : i32, i32, i32
  }
  func.func @transform_14(%arg0: i32, %arg1: i32) -> (i32, i32) {
    %c0_i32 = arith.constant 0 : i32
    %c0_i32_0 = arith.constant 0 : i32
    %c0_i32_1 = arith.constant 0 : i32
    return %c0_i32, %c0_i32_0 : i32, i32
  }
  func.func @transform_15(%arg0: i32, %arg1: i32) -> (i32, i32) {
    %c0_i32 = arith.constant 0 : i32
    %c0_i32_0 = arith.constant 0 : i32
    %c0_i32_1 = arith.constant 0 : i32
    return %c0_i32, %c0_i32_0 : i32, i32
  }
  func.func @transform_16(%arg0: i32, %arg1: i32) -> (i32, i32, i32) {
    %c0_i32 = arith.constant 0 : i32
    %c0_i32_0 = arith.constant 0 : i32
    %c0_i32_1 = arith.constant 0 : i32
    return %arg0, %c0_i32, %c0_i32_0 : i32, i32, i32
  }
}

</mosaic_0001>

<bundles_post_ra>
// kernel: tpu_custom_call.1
= control target key start
LH: loop header
LB: loop body
LE: loop exit
PB: predicated region body
PF: predicated region fallthrough
CT: control target
= control target key end

     0   :  { %s5009_s0 = inlined_call_operand.hbm [shape: f32[2,8,128], index: 0, kind: input, shape index: {}]   ;;  %s5010_s1 = inlined_call_operand.hbm [shape: f32[2,8,8], index: 1, kind: input, shape index: {}]   ;;  %s5011_s2 = inlined_call_operand.hbm [shape: f32[2,1,128], index: 2, kind: input, shape index: {}]   ;;  %s5012_s3 = inlined_call_operand.hbm [shape: f32[2,1,128], index: 3, kind: input, shape index: {}]   ;;  %s5013_s4 = inlined_call_operand.hbm [shape: bf16[2,128,384], index: 4, kind: input, shape index: {}]   ;;  %s5014_s5 = inlined_call_operand.vmem [shape: f32[2,1,384], index: 5, kind: input, shape index: {}]   ;;  %s5015_s6 = inlined_call_operand.hbm [shape: bf16[2,128,128], index: 6, kind: input, shape index: {}]   ;;  %s5016_s7 = inlined_call_operand.vmem [shape: f32[2,1,128], index: 7, kind: input, shape index: {}]   ;;  %s5017_s8 = inlined_call_operand.vmem [shape: f32[2,1,128], index: 8, kind: input, shape index: {}]   ;;  %s5018_s9 = inlined_call_operand.vmem [shape: f32[2,1,128], index: 9, kind: input, shape index: {}]   ;;  %s5019_s10 = inlined_call_operand.hbm [shape: bf16[2,128,512], index: 10, kind: input, shape index: {}]   ;;  %s5020_s11 = inlined_call_operand.vmem [shape: f32[2,1,512], index: 11, kind: input, shape index: {}]   ;;  %s5021_s12 = inlined_call_operand.hbm [shape: bf16[2,512,128], index: 12, kind: input, shape index: {}]   ;;  %s5022_s13 = inlined_call_operand.vmem [shape: f32[2,1,128], index: 13, kind: input, shape index: {}]   ;;  %s5023_s14 = inlined_call_operand.vmem [shape: f32[1,128], index: 14, kind: input, shape index: {}]   ;;  %s5024_s15 = inlined_call_operand.vmem [shape: f32[1,128], index: 15, kind: input, shape index: {}]   ;;  %s5025_s16 = inlined_call_operand.hbm [shape: f32[2,8,128], index: 16, kind: output, shape index: {}]  }
   0x1   :  { %5063 = sst [smem:[#allocation46_spill]] %s5009_s0 }
   0x2   :  { %5064 = sst [smem:[#allocation47_spill]] %s5010_s1 }
   0x3   :  { %5065 = sst [smem:[#allocation48_spill]] %s5011_s2 }
   0x4   :  { %5066 = sst [smem:[#allocation49_spill]] %s5012_s3 }
   0x5   :  { %5067 = sst [smem:[#allocation50_spill]] %s5013_s4 }
   0x6   :  { %5068 = sst [smem:[#allocation51_spill]] %s5014_s5 }
   0x7   :  { %5069 = sst [smem:[#allocation52_spill]] %s5015_s6 }
   0x8   :  { %5070 = sst [smem:[#allocation53_spill]] %s5016_s7 }
   0x9   :  { %5071 = sst [smem:[#allocation54_spill]] %s5017_s8 }
   0xa   :  { %5072 = sst [smem:[#allocation55_spill]] %s5018_s9 }
   0xb   :  { %5073 = sst [smem:[#allocation56_spill]] %s5019_s10 }
   0xc   :  { %5074 = sst [smem:[#allocation57_spill]] %s5020_s11 }
   0xd   :  { %5075 = sst [smem:[#allocation58_spill]] %s5021_s12 }
   0xe   :  { %5076 = sst [smem:[#allocation59_spill]] %s5022_s13 }
   0xf   :  { %5077 = sst [smem:[#allocation60_spill]] %s5023_s14 }
  0x10   :  { %5078 = sst [smem:[#allocation61_spill]] %s5024_s15 }
  0x11   :  { %5079 = sst [smem:[#allocation62_spill]] %s5025_s16 }
  0x12   :  { %21 = vsyncpa [#allocation5], 0 }
  0x13   :  { %23 = vsyncpa [#allocation5 + $0x1], 0 }
  0x14   :  { %24 = vsyncpa [#allocation8], 0 }
  0x15   :  { %26 = vsyncpa [#allocation8 + $0x1], 0 }
  0x16   :  { %27 = vsyncpa [#allocation11], 0 }
  0x17   :  { %29 = vsyncpa [#allocation11 + $0x1], 0 }
  0x18   :  { %30 = vsyncpa [#allocation14], 0 }
  0x19   :  { %32 = vsyncpa [#allocation14 + $0x1], 0 }
  0x1a   :  { %33 = vsyncpa [#allocation17], 0 }
  0x1b   :  { %35 = vsyncpa [#allocation17 + $0x1], 0 }
  0x1c   :  { %36 = vsyncpa [#allocation6], 0 }
  0x1d   :  { %38 = vsyncpa [#allocation6 + $0x1], 0  ;;  %s4144_s21 = smov 0   ;;  %s4146_s22 = smov 0  }
  0x1e   :  { %s4148_s23 = smov 0   ;;  %s4150_s24 = smov 0  }
  0x1f   :  { %s4152_s25 = smov 0   ;;  %s4154_s26 = smov 0  }
  0x20   :  { %s4156_s27 = smov 0   ;;  %s4158_s28 = smov 0  }
  0x21   :  { %s4160_s29 = smov 0   ;;  %s4162_s30 = smov 0  }
  0x22   :  { %s4164_s0 = smov 0  }
  0x23 LB: > { %5080 = sst [smem:[#allocation26_spill]] %s4000_s22  ;;  %s4200_s17 = sadd.s32 4294967295, %s4036_s0   ;;  %s4036_s0 = sphi %s4164_s0, %s44_s0   ;;  %s4032_s30 = sphi %s4162_s30, %s5173_s30   ;;  %s4028_s29 = sphi %s4160_s29, %s5172_s29   ;;  %s4024_s28 = sphi %s4158_s28, %s5171_s28   ;;  %s4020_s27 = sphi %s4156_s27, %s5170_s27   ;;  %s4016_s26 = sphi %s4154_s26, %s5169_s26   ;;  %s4012_s25 = sphi %s4152_s25, %s5168_s25   ;;  %s4008_s24 = sphi %s4150_s24, %s5167_s24   ;;  %s4004_s23 = sphi %s4148_s23, %s5166_s23   ;;  %s4000_s22 = sphi %s4146_s22, %s5165_s22   ;;  %s3996_s21 = sphi %s4144_s21, %s5164_s21  }
  0x24   : > { %5081 = sst [smem:[#allocation27_spill]] %s4004_s23  ;;  %s3029_s18 = sadd.s32 4294967294, %s4036_s0  }
  0x25   : > { %5082 = sst [smem:[#allocation28_spill]] %s4008_s24  ;;  %s53_s19 = sadd.s32 1, %s4028_s29 }
  0x26   : > { %5083 = sst [smem:[#allocation29_spill]] %s4012_s25  ;;  %s56_s20 = sadd.s32 1, %s4032_s30 }
  0x27   : > { %5084 = sst [smem:[#allocation30_spill]] %s4016_s26  ;;  %p54_p0 = scmp.ge.s32.totalorder %s53_s19, 2 }
  0x28   : > { %5085 = sst [smem:[#allocation31_spill]] %s4020_s27  ;;  %s63_s16 = sadd.s32 1, %s4016_s26 }
  0x29   : > { %5086 = sst [smem:[#allocation32_spill]] %s4024_s28  ;;  %p70_p1 = scmp.ne.s32.totalorder %s4016_s26, %s4012_s25 }
  0x2a   : > { %5087 = sst [smem:[#allocation33_spill]] %s4028_s29  ;;  %p71_p2 = scmp.eq.s32.totalorder %s4036_s0, 0 }
  0x2b   : > { %5088 = sst [smem:[#allocation34_spill]] %s4032_s30  ;;  %s5175_s19 = smov (%p54_p0, %s53_s19), 0 }
  0x2c   : > { %5089 = sst [smem:[#allocation35_spill]] %s4036_s0  ;;  %s5177_s20 = smov (!%p54_p0, %s56_s20), %s4032_s30 }
  0x2d   : > { %5090 = sst [smem:[#allocation36_spill]] %s4200_s17  ;;  %p4217_p3 = por %p71_p2, %p70_p1 }
  0x2e   : > { %5091 = sst [smem:[#allocation37_spill]] %s5175_s19  ;;  %p5029_p4 = scmp.ne.s32.totalorder %s4012_s25, %s4008_s24 }
  0x2f   : > { %p58_p5 = scmp.ge.s32.totalorder %s5177_s20, 2  ;;  %p77_p6 = scmp.eq.s32.totalorder %s4200_s17, 0 }
  0x30   : > { %s112_s15 = ssub.s32 %s4028_s29, %s5175_s19  ;;  %s115_s14 = sadd.s32 1, %s4004_s23 }
  0x31   : > { %s5179_s20 = smov (%p58_p5, %s5177_s20), 0  ;;  %p4234_p7 = por %p77_p6, %p5029_p4 }
  0x32   : > { %5093 = sst [smem:[#allocation38_spill]] %s5179_s20  ;;  %p113_p8 = scmp.eq.s32.totalorder %s112_s15, 0 }
  0x33   : > { %s5094_s13 = scalar_select %p4234_p7, 1, 0 }
  0x34   : > { %s60_s11 = ssub.s32 %s4032_s30, %s5179_s20  ;;  %p122_p9 = scmp.ne.s32.totalorder %s4004_s23, %s4000_s22 }
  0x35   : > { %5095 = sst [smem:[#allocation39_spill]] %s5094_s13  ;;  %p61_p10 = scmp.eq.s32.totalorder %s60_s11, 0 }
  0x36   : > { %p128_p11 = scmp.ne.s32.totalorder %s4000_s22, %s3996_s21  ;;  %p4252_p12 = por %p122_p9, %p71_p2 }
  0x37   : > { %s4245_s19 = scalar_select %p113_p8, %s4004_s23, %s115_s14  }
  0x38   : > { %s4248_s5 = scalar_select %p61_p10, %s4016_s26, %s63_s16  }
  0x39   : > { %5096 = sst [smem:[#allocation40_spill]] %s4245_s19  ;;  %p4258_p13 = por %p128_p11, %p77_p6 }
  0x3a   : > { %5097 = sst [smem:[#allocation41_spill]] %s4248_s5  ;;  %p480_p0 = scmp.eq.s32.totalorder %s4200_s17, 3 }
  0x3b   : > { %s5099_s15 = scalar_select %p4258_p13, 1, 0 }
  0x3c   : > { %p486_p5 = scmp.eq.s32.totalorder %s3029_s18, 3  ;;  %p3394_p4 = scmp.lt.s32.totalorder %s4036_s0, 4 }
  0x3d   : > { %5100 = sst [smem:[#allocation42_spill]] %s5099_s15  ;;  %p4267_p7 = por %p480_p0, %p70_p1 }
  0x3e   : > { %p5103_p8 = scmp.ne.s32.totalorder %s4012_s25, %s4008_s24  ;;  %s5034_s16 = sand.u32 1, %s4016_s26  }
  0x3f   : > { %s5101_s11 = scalar_select %p4267_p7, 1, 0 }
  0x40   : > { %p4274_p10 = por %p486_p5, %p5103_p8  ;;  %s5037_s21 = sshll.u32 %s4032_s30, 7 }
  0x41   : > { %5102 = sst [smem:[#allocation43_spill]] %s5101_s11  ;;  %s4282_s20 = sshll.u32 %s5034_s16, 3 }
  0x42   : > { %s5104_s14 = scalar_select %p4274_p10, 1, 0 }
  0x43   : > { %p4286_p2 = pnand %p3394_p4, %p4217_p3  ;;  %s4291_s5 = sand.u32 1, %s4036_s0  }
  0x44   : > { %5105 = sst [smem:[#allocation44_spill]] %s5104_s14  ;;  %s5107_s1 = sld [smem:[#allocation47_spill]] }
  0x45   : > { %s5106_s18 = scalar_select %p4286_p2, 1, 0 }
  0x46   : > { %s534_s28 = scalar_lea.vmem [#allocation7], %s4282_s20  ;;  %p4305_p1 = pnand %p3394_p4, %p4252_p12 }
  0x47   : > { %s541_s16 = sshll.u32 %s534_s28, 4  ;;  %s5041_s8 = scalar_lea.sflag [#allocation8], %s4291_s5  ;;  %s4301_s16 = int_to_ptr.vmem [resolvable:$true] %s541_s16 }
  0x48   : > { %s5108_s11 = scalar_select %p4305_p1, 1, 0 }
  0x49   : > { %p5047_p6 = pneg %p4286_p2 }
  0x4a   : > { %s4298_s14 = scalar_lea.hbm %s5107_s1, %s5037_s21  ;;  %s3659_s28 = scalar_lea.hbm %s5107_s1, 256 }
  0x4b   : > { %s3654_s7 = scalar_lea.hbm %s4298_s14, 128  ;;  %p3660_p4 = scmp.lt.u32.totalorder %s4298_s14, %s5107_s1 }
  0x4c   : > { %p3655_p3 = scmp.ne.s32.totalorder %s4298_s14, %s3654_s7  ;;  %p3661_p12 = scmp.lt.u32.totalorder %s3659_s28, %s3654_s7 }
  0x4d   : > { %p3663_p5 = scmp.lt.u32.totalorder %s3654_s7, %s4298_s14 }
  0x4e   : > { %p3657_p9 = pnand %p5047_p6, %p3655_p3  ;;  %p3662_p0 = por %p3661_p12, %p3660_p4 }
  0x50   : > { %p3658_p11 = pneg %p3657_p9  ;;  %p3664_p8 = por %p3663_p5, %p3662_p0 }
  0x52   : > { %p3665_p10 = pnand %p3664_p8, %p3658_p11 }
  0x54   : > { %3668 = shalt.err (!%p3665_p10)
}
  0x55   : > { %s3669_s9 = scalar_lea.vmem %s4301_s16, 128  ;;  %s4038_s24 = smov [#allocation7]  }
  0x56   : > { %p3670_p3 = scmp.ne.s32.totalorder %s4301_s16, %s3669_s9  ;;  %s3674_s19 = sshll.u32 %s4038_s24, 4  ;;  %s3675_s19 = int_to_ptr.vmem [resolvable:$false] %s3674_s19 }
  0x57   : > { %s3676_s27 = scalar_lea.vmem %s3675_s19, 256  ;;  %p3677_p13 = scmp.lt.s32.totalorder %s4301_s16, %s3675_s19 }
  0x58   : > { %p3672_p9 = pnand %p3670_p3, %p5047_p6  ;;  %p3678_p4 = scmp.lt.s32.totalorder %s3676_s27, %s3669_s9 }
  0x5a   : > { %p3673_p7 = pneg %p3672_p9  ;;  %p3679_p12 = por %p3678_p4, %p3677_p13 }
  0x5c   : > { %p3680_p0 = pnand %p3679_p12, %p3673_p7 }
  0x5e   : > { %3683 = shalt.err (!%p3680_p0)
}
  0x5f   : > { %3371 = dma.hbm_to_vmem [thread:$0]  (!%p4286_p2), %s4298_s14, 128, %s4301_s16, %s5041_s8  }
  0x60   : > { %p3048_p10 = scmp.ge.s32.totalorder %s4036_s0, 1  ;;  %p702_p11 = scmp.lt.s32.totalorder %s4036_s0, 5 }
  0x61   : > { %s4340_s7 = sand.u32 1, %s4004_s23   ;;  %s3036_s21 = sshll.u32 %s4028_s29, 4 }
  0x62   : > { %p4343_p7 = pnand %p3048_p10, %p702_p11  ;;  %s5111_s2 = sld [smem:[#allocation48_spill]] }
  0x63   : > { %s5112_s3 = sld [smem:[#allocation49_spill]]  ;;  %s568_s16 = scalar_lea.vmem [#allocation10], %s4340_s7 }
  0x64   : > { %s5109_s28 = scalar_select %p4343_p7, 1, 0 }
  0x65   : > { %s575_s8 = sshll.u32 %s568_s16, 4  ;;  %s5051_s0 = scalar_lea.sflag [#allocation11], %s4291_s5  ;;  %s4358_s8 = int_to_ptr.vmem [resolvable:$true] %s575_s8 }
  0x66   : > { %5110 = sst [smem:[#allocation45_spill]] %s5109_s28  ;;  %p4366_p5 = pneg %p4305_p1 }
  0x68   : > { %s4350_s19 = scalar_lea.hbm %s5111_s2, %s3036_s21 }
  0x69   : > { %s4355_s14 = scalar_lea.hbm %s5112_s3, %s3036_s21  ;;  %s3689_s24 = scalar_lea.hbm %s5112_s3, 32 }
  0x6a   : > { %s3684_s15 = scalar_lea.hbm %s4355_s14, 16  ;;  %p3690_p9 = scmp.lt.u32.totalorder %s4355_s14, %s5112_s3 }
  0x6b   : > { %p3685_p13 = scmp.ne.s32.totalorder %s4355_s14, %s3684_s15  ;;  %p3691_p4 = scmp.lt.u32.totalorder %s3689_s24, %s3684_s15 }
  0x6c   : > { %p3693_p0 = scmp.lt.u32.totalorder %s3684_s15, %s4355_s14 }
  0x6d   : > { %p3687_p8 = pnand %p4366_p5, %p3685_p13  ;;  %p3692_p12 = por %p3691_p4, %p3690_p9 }
  0x6f   : > { %p3688_p3 = pneg %p3687_p8  ;;  %p3694_p10 = por %p3693_p0, %p3692_p12 }
  0x71   : > { %p3695_p11 = pnand %p3694_p10, %p3688_p3 }
  0x73   : > { %3698 = shalt.err (!%p3695_p11)
}
  0x74   : > { %s3699_s23 = scalar_lea.vmem %s4358_s8, 16  ;;  %s4039_s1 = smov [#allocation10]  }
  0x75   : > { %p3700_p13 = scmp.ne.s32.totalorder %s4358_s8, %s3699_s23  ;;  %s3704_s21 = sshll.u32 %s4039_s1, 4  ;;  %s3705_s21 = int_to_ptr.vmem [resolvable:$false] %s3704_s21 }
  0x76   : > { %s3706_s27 = scalar_lea.vmem %s3705_s21, 32  ;;  %p3707_p7 = scmp.lt.s32.totalorder %s4358_s8, %s3705_s21 }
  0x77   : > { %p3702_p8 = pnand %p3700_p13, %p4366_p5  ;;  %p3708_p2 = scmp.lt.s32.totalorder %s3706_s27, %s3699_s23 }
  0x79   : > { %p3703_p6 = pneg %p3702_p8  ;;  %p3709_p9 = por %p3708_p2, %p3707_p7 }
  0x7b   : > { %p3710_p4 = pnand %p3709_p9, %p3703_p6 }
  0x7d   : > { %3713 = shalt.err (!%p3710_p4)
}
  0x7e   : > { %3377 = dma.hbm_to_vmem [thread:$0]  (!%p4305_p1), %s4355_s14, 16, %s4358_s8, %s5051_s0  }
  0x7f   : > { %s3182_s15 = sshll.u32 %s4028_s29, 10  ;;  %s5114_s6 = sld [smem:[#allocation52_spill]] }
  0x80   : > { %s5115_s23 = sshll.u32 %s4340_s7, 6  ;;  %s611_s3 = scalar_lea.sflag [#allocation14], %s4291_s5 }
  0x81   : > { %s614_s21 = scalar_lea.vmem [#allocation13], %s5115_s23 }
  0x82   : > { %s621_s27 = sshll.u32 %s614_s21, 4  ;;  %s4399_s27 = int_to_ptr.vmem [resolvable:$true] %s621_s27 }
  0x85   : > { %s4395_s1 = scalar_lea.hbm %s5114_s6, %s3182_s15  ;;  %s3719_s15 = scalar_lea.hbm %s5114_s6, 2048 }
  0x86   : > { %s3714_s22 = scalar_lea.hbm %s4395_s1, 1024  ;;  %p3720_p3 = scmp.lt.u32.totalorder %s4395_s1, %s5114_s6 }
  0x87   : > { %p3715_p2 = scmp.ne.s32.totalorder %s4395_s1, %s3714_s22  ;;  %p3721_p12 = scmp.lt.u32.totalorder %s3719_s15, %s3714_s22 }
  0x88   : > { %p3723_p10 = scmp.lt.u32.totalorder %s3714_s22, %s4395_s1 }
  0x89   : > { %p3717_p6 = pnand %p3715_p2, %p4366_p5  ;;  %p3722_p0 = por %p3721_p12, %p3720_p3 }
  0x8b   : > { %p3718_p7 = pneg %p3717_p6  ;;  %p3724_p11 = por %p3723_p10, %p3722_p0 }
  0x8d   : > { %p3725_p13 = pnand %p3724_p11, %p3718_p7 }
  0x8f   : > { %3728 = shalt.err (!%p3725_p13)
}
  0x90   : > { %s3729_s23 = scalar_lea.vmem %s4399_s27, 1024  ;;  %s4040_s21 = smov [#allocation13]  }
  0x91   : > { %p3730_p8 = scmp.ne.s32.totalorder %s4399_s27, %s3729_s23  ;;  %s3734_s8 = sshll.u32 %s4040_s21, 4  ;;  %s3735_s8 = int_to_ptr.vmem [resolvable:$false] %s3734_s8 }
  0x92   : > { %s3736_s14 = scalar_lea.vmem %s3735_s8, 2048  ;;  %p3737_p2 = scmp.lt.s32.totalorder %s4399_s27, %s3735_s8 }
  0x93   : > { %p3732_p9 = pnand %p3730_p8, %p4366_p5  ;;  %p3738_p6 = scmp.lt.s32.totalorder %s3736_s14, %s3729_s23 }
  0x95   : > { %p3733_p4 = pneg %p3732_p9  ;;  %p3739_p3 = por %p3738_p6, %p3737_p2 }
  0x97   : > { %p3740_p12 = pnand %p3739_p3, %p3733_p4 }
  0x99   : > { %3743 = shalt.err (!%p3740_p12)
}
  0x9a   : > { %s4041_s22 = smov 64   ;;  %s4042_s15 = smov 4  }
  0x9b   : > { %3383 = dma.hbm_to_vmem [thread:$0]  (!%p4305_p1), %s4395_s1, 1024, %s4399_s27, %s611_s3, %s4041_s22, %s4041_s22, %s4042_s15  }
  0x9c   : > { %s5116_s24 = sshll.u32 %s4032_s30, 7  ;;  %s5117_s21 = sld [smem:[#allocation46_spill]] }
  0x9d   : > { %s516_s0 = scalar_lea.vmem [#allocation4], %s4282_s20  ;;  %s551_s17 = scalar_lea.vmem [#allocation9], %s4340_s7 }
  0x9e   : > { %s523_s6 = sshll.u32 %s516_s0, 4  ;;  %s4439_s13 = sshll.u32 %s551_s17, 4  ;;  %s4436_s6 = int_to_ptr.vmem [resolvable:$true] %s523_s6  ;;  %s559_s13 = int_to_ptr.vmem [resolvable:$true] %s4439_s13 }
  0x9f   : > { %s5119_s25 = sand.u32 1, %s4016_s26   ;;  %p5120_p0 = scmp.ne.s32.totalorder %s5106_s18, 0 }
  0xa0   : > { %s513_s28 = scalar_lea.sflag [#allocation5], %s5119_s25 }
  0xa1   : > { %p5121_p10 = pneg %p5120_p0 }
  0xa2   : > { %s5118_s8 = smov %s5117_s21  ;;  %s4433_s14 = scalar_lea.hbm %s5117_s21, %s5116_s24 }
  0xa3   : > { %s3744_s1 = scalar_lea.hbm %s4433_s14, 128  ;;  %s3749_s16 = scalar_lea.hbm %s5118_s8, 256 }
  0xa4   : > { %p3745_p7 = scmp.ne.s32.totalorder %s4433_s14, %s3744_s1  ;;  %p3750_p8 = scmp.lt.u32.totalorder %s4433_s14, %s5118_s8 }
  0xa5   : > { %p3751_p9 = scmp.lt.u32.totalorder %s3749_s16, %s3744_s1  ;;  %p3753_p2 = scmp.lt.u32.totalorder %s3744_s1, %s4433_s14 }
  0xa6   : > { %p3747_p11 = pnand %p3745_p7, %p5121_p10 }
  0xa7   : > { %p3752_p4 = por %p3751_p9, %p3750_p8 }
  0xa8   : > { %p3748_p13 = pneg %p3747_p11 }
  0xa9   : > { %p3754_p6 = por %p3753_p2, %p3752_p4 }
  0xab   : > { %p3755_p3 = pnand %p3754_p6, %p3748_p13 }
  0xad   : > { %3758 = shalt.err (!%p3755_p3)
}
  0xae   : > { %s3759_s25 = scalar_lea.vmem %s4436_s6, 128  ;;  %p5122_p7 = pmov %p5121_p10 }
  0xaf   : > { %p3760_p12 = scmp.ne.s32.totalorder %s4436_s6, %s3759_s25  ;;  %s4043_s0 = smov [#allocation4]  }
  0xb0   : > { %s3764_s17 = sshll.u32 %s4043_s0, 4  ;;  %s3765_s17 = int_to_ptr.vmem [resolvable:$false] %s3764_s17 }
  0xb1   : > { %p3762_p10 = pnand %p3760_p12, %p5122_p7  ;;  %s3766_s21 = scalar_lea.vmem %s3765_s17, 256 }
  0xb2   : > { %p3767_p1 = scmp.lt.s32.totalorder %s4436_s6, %s3765_s17  ;;  %p3768_p8 = scmp.lt.s32.totalorder %s3766_s21, %s3759_s25 }
  0xb3   : > { %p3763_p11 = pneg %p3762_p10 }
  0xb4   : > { %p3769_p9 = por %p3768_p8, %p3767_p1 }
  0xb6   : > { %p3770_p4 = pnand %p3769_p9, %p3763_p11 }
  0xb8   : > { %3773 = shalt.err (!%p3770_p4)
}
  0xb9   : > { %3368 = dma.hbm_to_vmem [thread:$0]  (!%p5120_p0), %s4433_s14, 128, %s4436_s6, %s513_s28  }
  0xba   : > { %s3343_s1 = smul.u32 192, %s4340_s7  ;;  %s3774_s27 = scalar_lea.hbm %s4350_s19, 16 }
  0xbb   : > { %p3775_p13 = scmp.ne.s32.totalorder %s4350_s19, %s3774_s27  ;;  %s3779_s18 = scalar_lea.hbm %s5111_s2, 32 }
  0xbc   : > { %p3780_p6 = scmp.lt.u32.totalorder %s4350_s19, %s5111_s2  ;;  %p3781_p3 = scmp.lt.u32.totalorder %s3779_s18, %s3774_s27 }
  0xbd   : > { %p3777_p1 = pnand %p3775_p13, %p4366_p5  ;;  %p3783_p7 = scmp.lt.u32.totalorder %s3774_s27, %s4350_s19 }
  0xbe   : > { %p3782_p12 = por %p3781_p3, %p3780_p6 }
  0xbf   : > { %p3778_p2 = pneg %p3777_p1 }
  0xc0   : > { %p3784_p10 = por %p3783_p7, %p3782_p12 }
  0xc2   : > { %p3785_p0 = pnand %p3784_p10, %p3778_p2 }
  0xc4   : > { %3788 = shalt.err (!%p3785_p0)
}
  0xc5   : > { %s3789_s6 = scalar_lea.vmem %s559_s13, 16  ;;  %s4044_s28 = smov [#allocation9]  }
  0xc6   : > { %p3790_p11 = scmp.ne.s32.totalorder %s559_s13, %s3789_s6  ;;  %s3794_s14 = sshll.u32 %s4044_s28, 4  ;;  %s3795_s14 = int_to_ptr.vmem [resolvable:$false] %s3794_s14 }
  0xc7   : > { %s3796_s25 = scalar_lea.vmem %s3795_s14, 32  ;;  %p3797_p4 = scmp.lt.s32.totalorder %s559_s13, %s3795_s14 }
  0xc8   : > { %p3792_p8 = pnand %p3790_p11, %p4366_p5  ;;  %p3798_p13 = scmp.lt.s32.totalorder %s3796_s25, %s3789_s6 }
  0xca   : > { %p3793_p9 = pneg %p3792_p8  ;;  %p3799_p1 = por %p3798_p13, %p3797_p4 }
  0xcc   : > { %p3800_p3 = pnand %p3799_p1, %p3793_p9 }
  0xce   : > { %3803 = shalt.err (!%p3800_p3)
}
  0xcf   : > { %p5123_p6 = scmp.ne.s32.totalorder %s5108_s11, 0  ;;  %s5124_s0 = scalar_lea.sflag [#allocation8], %s4291_s5 }
  0xd0   : > { %s3344_s17 = smul.u32 3072, %s4028_s29  ;;  %s586_s21 = scalar_lea.vmem [#allocation12], %s3343_s1 }
  0xd1   : > { %3374 = dma.hbm_to_vmem [thread:$0]  (!%p5123_p6), %s4350_s19, 16, %s559_s13, %s5124_s0  }
  0xd2   : > { %s593_s27 = sshll.u32 %s586_s21, 4  ;;  %s5125_s4 = sld [smem:[#allocation50_spill]]  ;;  %s4493_s27 = int_to_ptr.vmem [resolvable:$true] %s593_s27 }
  0xd3   : > { %s3042_s23 = sshll.u32 %s4340_s7, 8 }
  0xd8   : > { %s4491_s18 = scalar_lea.hbm %s5125_s4, %s3344_s17  ;;  %s3809_s1 = scalar_lea.hbm %s5125_s4, 6144 }
  0xd9   : > { %s3804_s20 = scalar_lea.hbm %s4491_s18, 3072  ;;  %p3810_p10 = scmp.lt.u32.totalorder %s4491_s18, %s5125_s4 }
  0xda   : > { %p3805_p2 = scmp.ne.s32.totalorder %s4491_s18, %s3804_s20  ;;  %p3811_p0 = scmp.lt.u32.totalorder %s3809_s1, %s3804_s20 }
  0xdb   : > { %p3813_p8 = scmp.lt.u32.totalorder %s3804_s20, %s4491_s18 }
  0xdc   : > { %p3807_p12 = pnand %p3805_p2, %p4366_p5  ;;  %p3812_p11 = por %p3811_p0, %p3810_p10 }
  0xde   : > { %p3808_p7 = pneg %p3807_p12  ;;  %p3814_p9 = por %p3813_p8, %p3812_p11 }
  0xe0   : > { %p3815_p4 = pnand %p3814_p9, %p3808_p7 }
  0xe2   : > { %3818 = shalt.err (!%p3815_p4)
}
  0xe3   : > { %s3819_s14 = scalar_lea.vmem %s4493_s27, 3072  ;;  %s4045_s25 = smov [#allocation12]  }
  0xe4   : > { %p3820_p13 = scmp.ne.s32.totalorder %s4493_s27, %s3819_s14  ;;  %s3824_s0 = sshll.u32 %s4045_s25, 4  ;;  %s3825_s0 = int_to_ptr.vmem [resolvable:$false] %s3824_s0 }
  0xe5   : > { %s3826_s17 = scalar_lea.vmem %s3825_s0, 6144  ;;  %p3827_p2 = scmp.lt.s32.totalorder %s4493_s27, %s3825_s0 }
  0xe6   : > { %p3822_p1 = pnand %p3820_p13, %p4366_p5  ;;  %p3828_p12 = scmp.lt.s32.totalorder %s3826_s17, %s3819_s14 }
  0xe8   : > { %p3823_p3 = pneg %p3822_p1  ;;  %p3829_p10 = por %p3828_p12, %p3827_p2 }
  0xea   : > { %p3830_p0 = pnand %p3829_p10, %p3823_p3 }
  0xec   : > { %3833 = shalt.err (!%p3830_p0)
}
  0xed   : > { %s4046_s21 = smov 192   ;;  %s4047_s24 = smov 12  }
  0xee   : > { %s5126_s16 = scalar_lea.sflag [#allocation11], %s4291_s5  ;;  %s3183_s20 = sshll.u32 %s4028_s29, 12 }
  0xef   : > { %3380 = dma.hbm_to_vmem [thread:$0]  (!%p5123_p6), %s4491_s18, 3072, %s4493_s27, %s5126_s16, %s4046_s21, %s4046_s21, %s4047_s24  }
  0xf0   : > { %s5127_s10 = sld [smem:[#allocation56_spill]]  ;;  %s653_s6 = scalar_lea.vmem [#allocation15], %s3042_s23 }
  0xf1   : > { %s660_s28 = sshll.u32 %s653_s6, 4  ;;  %s4529_s28 = int_to_ptr.vmem [resolvable:$true] %s660_s28 }
  0xf6   : > { %s4525_s1 = scalar_lea.hbm %s5127_s10, %s3183_s20  ;;  %s3839_s25 = scalar_lea.hbm %s5127_s10, 8192 }
  0xf7   : > { %s3834_s14 = scalar_lea.hbm %s4525_s1, 4096  ;;  %p3840_p9 = scmp.lt.u32.totalorder %s4525_s1, %s5127_s10 }
  0xf8   : > { %p3835_p7 = scmp.ne.s32.totalorder %s4525_s1, %s3834_s14  ;;  %p3841_p4 = scmp.lt.u32.totalorder %s3839_s25, %s3834_s14 }
  0xf9   : > { %p3843_p1 = scmp.lt.u32.totalorder %s3834_s14, %s4525_s1 }
  0xfa   : > { %p3837_p11 = pnand %p3835_p7, %p4366_p5  ;;  %p3842_p13 = por %p3841_p4, %p3840_p9 }
  0xfc   : > { %p3838_p8 = pneg %p3837_p11  ;;  %p3844_p3 = por %p3843_p1, %p3842_p13 }
  0xfe   : > { %p3845_p2 = pnand %p3844_p3, %p3838_p8 }
 0x100   : > { %3848 = shalt.err (!%p3845_p2)
}
 0x101   : > { %s3849_s21 = scalar_lea.vmem %s4529_s28, 4096  ;;  %s4048_s24 = smov [#allocation15]  }
 0x102   : > { %p3850_p12 = scmp.ne.s32.totalorder %s4529_s28, %s3849_s21  ;;  %s3854_s16 = sshll.u32 %s4048_s24, 4  ;;  %s3855_s16 = int_to_ptr.vmem [resolvable:$false] %s3854_s16 }
 0x103   : > { %s3856_s13 = scalar_lea.vmem %s3855_s16, 8192  ;;  %p3857_p7 = scmp.lt.s32.totalorder %s4529_s28, %s3855_s16 }
 0x104   : > { %p3852_p10 = pnand %p3850_p12, %p4366_p5  ;;  %p3858_p11 = scmp.lt.s32.totalorder %s3856_s13, %s3849_s21 }
 0x106   : > { %p3853_p0 = pneg %p3852_p10  ;;  %p3859_p9 = por %p3858_p11, %p3857_p7 }
 0x108   : > { %p3860_p4 = pnand %p3859_p9, %p3853_p0 }
 0x10a   : > { %3863 = shalt.err (!%p3860_p4)
}
 0x10b   : > { %s4049_s19 = smov 256   ;;  %s4050_s6 = smov 16  }
 0x10c   : > { %3386 = dma.hbm_to_vmem [thread:$0]  (!%p5123_p6), %s4525_s1, 4096, %s4529_s28, %s611_s3, %s4049_s19, %s4049_s19, %s4050_s6  }
 0x10d   : > { %s5128_s12 = sld [smem:[#allocation58_spill]]  ;;  %s681_s25 = scalar_lea.vmem [#allocation16], %s3042_s23 }
 0x10e   : > { %s688_s0 = sshll.u32 %s681_s25, 4  ;;  %s678_s17 = scalar_lea.sflag [#allocation17], %s4340_s7  ;;  %s4563_s0 = int_to_ptr.vmem [resolvable:$true] %s688_s0 }
 0x113   : > { %s4559_s18 = scalar_lea.hbm %s5128_s12, %s3183_s20  ;;  %s3869_s20 = scalar_lea.hbm %s5128_s12, 8192 }
 0x114   : > { %s3864_s21 = scalar_lea.hbm %s4559_s18, 4096  ;;  %p3870_p3 = scmp.lt.u32.totalorder %s4559_s18, %s5128_s12 }
 0x115   : > { %p3865_p8 = scmp.ne.s32.totalorder %s4559_s18, %s3864_s21  ;;  %p3871_p2 = scmp.lt.u32.totalorder %s3869_s20, %s3864_s21 }
 0x116   : > { %p3873_p10 = scmp.lt.u32.totalorder %s3864_s21, %s4559_s18 }
 0x117   : > { %p3867_p13 = pnand %p3865_p8, %p4366_p5  ;;  %p3872_p12 = por %p3871_p2, %p3870_p3 }
 0x119   : > { %p3868_p1 = pneg %p3867_p13  ;;  %p3874_p0 = por %p3873_p10, %p3872_p12 }
 0x11b   : > { %p3875_p7 = pnand %p3874_p0, %p3868_p1 }
 0x11d   : > { %3878 = shalt.err (!%p3875_p7)
}
 0x11e   : > { %s3879_s23 = scalar_lea.vmem %s4563_s0, 4096  ;;  %s4051_s24 = smov [#allocation16]  }
 0x11f   : > { %p3880_p11 = scmp.ne.s32.totalorder %s4563_s0, %s3879_s23  ;;  %s3884_s16 = sshll.u32 %s4051_s24, 4  ;;  %s3885_s16 = int_to_ptr.vmem [resolvable:$false] %s3884_s16 }
 0x120   : > { %s3886_s13 = scalar_lea.vmem %s3885_s16, 8192  ;;  %p3887_p8 = scmp.lt.s32.totalorder %s4563_s0, %s3885_s16 }
 0x121   : > { %p3882_p9 = pnand %p3880_p11, %p4366_p5  ;;  %p3888_p13 = scmp.lt.s32.totalorder %s3886_s13, %s3879_s23 }
 0x123   : > { %p3883_p4 = pneg %p3882_p9  ;;  %p3889_p3 = por %p3888_p13, %p3887_p8 }
 0x125   : > { %p3890_p2 = pnand %p3889_p3, %p3883_p4 }
 0x127   : > { %3893 = shalt.err (!%p3890_p2)
}
 0x128   : > { %3389 = dma.hbm_to_vmem [thread:$0]  (!%p5123_p6), %s4559_s18, 4096, %s4563_s0, %s678_s17, %s4041_s22, %s4041_s22, %s4042_s15  }
 0x129   : > { %s5129_s9 = sld [smem:[#allocation45_spill]] }
 0x12f   : > { %p5130_p5 = scmp.ne.s32.totalorder %s5129_s9, 0 }
 0x130   : > { %s5131_s19 = sld [smem:[#allocation29_spill]] (!%p5130_p5)  ;;  %s5132_s6 = sld [smem:[#allocation39_spill]] (!%p5130_p5) }
 0x131   : > { %706 = sbr.rel (%p5130_p5) target bundleno = 4701 (0x125d), region = 84 }
 0x136   : > { %s4595_s14 = sand.u32 (!%p5130_p5), 1, %s5131_s19   ;;  %p5133_p1 = scmp.ne.s32.totalorder (!%p5130_p5), %s5132_s6, 0 }
 0x137   : > { %s4598_s27 = sshll.u32 (!%p5130_p5), %s4595_s14, 3  ;;  %s709_s11 = scalar_lea.sflag (!%p5130_p5), [#allocation5], %s4595_s14 }
 0x138   : > { %3967 = dma.done.wait (%p5133_p1), %s709_s11, 128  }
 0x139   : > { %3969 = vsyncadd (%p5133_p1), %s709_s11, 4294967168  ;;  %s5134_s7 = sld [smem:[#allocation36_spill]] }
 0x13f   : > { %s717_s22 = sand.u32 1, %s5134_s7  }
 0x140   : > { %s718_s15 = scalar_lea.sflag [#allocation8], %s717_s22 }
 0x141   : > { %3971 = dma.done.wait (%p5133_p1), %s718_s15, 128  }
 0x142   : > { %3973 = vsyncadd (%p5133_p1), %s718_s15, 4294967168  ;;  %s5135_s0 = sld [smem:[#allocation26_spill]] }
 0x143   : > { %s5136_s17 = sld [smem:[#allocation42_spill]] }
 0x148   : > { %s4613_s21 = sand.u32 1, %s5135_s0  }
 0x149   : > { %p5137_p6 = scmp.ne.s32.totalorder %s5136_s17, 0 }
 0x14b   : > { %3975 = dma.done.wait (%p5137_p6), %s718_s15, 16  }
 0x14c   : > { %3977 = vsyncadd (%p5137_p6), %s718_s15, 4294967280  ;;  %s735_s5 = scalar_lea.sflag [#allocation11], %s717_s22 }
 0x14d   : > { %3979 = dma.done.wait (%p5137_p6), %s735_s5, 3088  }
 0x14e   : > { %3981 = vsyncadd (%p5137_p6), %s735_s5, 4294964208  ;;  %s3345_s1 = smul.u32 192, %s4613_s21  ;;  %s3051_s28 = sshll.u32 %s4613_s21, 6 }
 0x14f   : > { %s752_s24 = scalar_lea.sflag [#allocation14], %s717_s22  ;;  %s4629_s16 = scalar_lea.vmem [#allocation13], %s3051_s28 }
 0x150   : > { %s4627_s23 = scalar_lea.vmem [#allocation12], %s3345_s1 }
 0x151   : > { %3983 = dma.done.wait (%p5137_p6), %s752_s24, 5120  }
 0x152   : > { %3985 = vsyncadd (%p5137_p6), %s752_s24, 4294962176  ;;  %s3052_s13 = sshll.u32 %s4613_s21, 8  ;;  %s770_s19 = scalar_lea.sflag [#allocation17], %s4613_s21 }
 0x153   : > { %s4636_s9 = scalar_lea.vmem [#allocation15], %s3052_s13  ;;  %s4639_s6 = scalar_lea.vmem [#allocation16], %s3052_s13 }
 0x154   : > { %3987 = dma.done.wait (%p5137_p6), %s770_s19, 4096  }
 0x155   : > { %3989 = vsyncadd (%p5137_p6), %s770_s19, 4294963200  ;;  %s5138_s11 = sld [smem:[#allocation31_spill]]  ;;  %s5139_s5 = sld [smem:[#allocation53_spill]] }
 0x156   : > { %s5140_s24 = sld [smem:[#allocation54_spill]]  ;;  %s5141_s20 = sld [smem:[#allocation55_spill]] }
 0x157   : > { %s5142_s4 = sld [smem:[#allocation51_spill]]  ;;  %s5143_s29 = sld [smem:[#allocation57_spill]] }
 0x158   : > { %s874_s17 = scalar_lea.vmem [#allocation18], %s4598_s27 }
 0x15b   : > { %p875_p12 = scmp.lt.s32.totalorder %s5138_s11, 1  ;;  %p3056_p10 = scmp.ne.s32.totalorder %s5138_s11, 0 }
 0x15c   : > { %s5145_s18 = scalar_lea.vmem (!%p3056_p10), [#allocation4], %s4598_s27 }
 0x15d   : > { %s4647_s7 = scalar_select %p875_p12, %s5138_s11, 1 }
 0x15e   : > { %v900_v0 = vld [vmem:[%s5145_s18] sm:$0xff] (!%p3056_p10) }
 0x15f   : > { %s3346_s22 = smul.u32 3, %s4647_s7  ;;  %s881_s1 = scalar_lea.vmem %s5139_s5, %s4647_s7  ;;  %901 = vst [vmem:[#allocation2] sm:$0xff] (!%p3056_p10), %v900_v0 }
 0x160   : > { %s884_s13 = scalar_lea.vmem %s5140_s24, %s4647_s7  ;;  %s887_s3 = scalar_lea.vmem %s5141_s20, %s4647_s7 }
 0x161   : > { %s4665_s8 = scalar_lea.vmem %s5142_s4, %s3346_s22  ;;  %s3055_s10 = sshll.u32 %s4647_s7, 2 }
 0x162   : > { %s4671_s26 = scalar_lea.vmem %s5143_s29, %s3055_s10  ;;  %s5144_s5 = sld [smem:[#allocation59_spill]] }
 0x163   : > { %899 = sbr.rel (%p3056_p10) target bundleno = 362 (0x16a), region = 120 }
 0x168   : > { %s894_s28 = scalar_lea.vmem %s5144_s5, %s4647_s7 }
 0x16a PF: > { %v4681_v1 = vld [vmem:[#allocation2] sm:$0xff]  ;;  %v4052_v4 = vmov 0.0   ;;  %v3499_v5 = vld [vmem:[%s4627_s23 + $0x8] ss:$12 sps:$4 sm:$0xff]   ;;  %v3502_v7 = vld [vmem:[%s4627_s23 + $0x18] ss:$12 sps:$4 sm:$0xff]   ;;  %v966_v42 = vlaneseq }
 0x16b   : > { %905 = vadd.xlane.f32.xlu0 %v4681_v1  ;;  %v3496_v2 = vld [vmem:[%s4627_s23 + $0x4] ss:$12 sps:$4 sm:$0xff]   ;;  %v3498_v3 = vld [vmem:[%s4627_s23] ss:$12 sps:$4 sm:$0xff]   ;;  %3263 = vmatprep.subr.bf16.mxu1 %v4052_v4  ;;  %v3500_v6 = vld [vmem:[%s4627_s23 + $0x1c] ss:$12 sps:$4 sm:$0xff]  }
 0x16c   : > { %1109 = vmatprep.subr.bf16.mxu0 %v3496_v2  ;;  %v3503_v8 = vld [vmem:[%s4627_s23 + $0x20] ss:$12 sps:$4 sm:$0xff]   ;;  %3264 = vmatpush3.bf16.msra.mxu1 %v3499_v5  ;;  %v3506_v14 = vld [vmem:[%s4627_s23 + $0x30] ss:$12 sps:$4 sm:$0xff]   ;;  %v3507_v15 = vld [vmem:[%s4627_s23 + $0x38] ss:$12 sps:$4 sm:$0xff]  }
 0x16d   : > { %v3504_v9 = vld [vmem:[%s4627_s23 + $0x34] ss:$12 sps:$4 sm:$0xff]   ;;  %1110 = vmatpush1.bf16.msra.mxu0 %v3498_v3  ;;  %3265 = vmatprep.subr.bf16.mxu1 %v4052_v4  ;;  %v3508_v16 = vld [vmem:[%s4627_s23 + $0x4c] ss:$12 sps:$4 sm:$0xff]   ;;  %v3511_v18 = vld [vmem:[%s4627_s23 + $0x50] ss:$12 sps:$4 sm:$0xff]  }
 0x16e   : > { %1111 = vmatprep.subr.bf16.mxu0 %v3500_v6  ;;  %v3510_v17 = vld [vmem:[%s4627_s23 + $0x48] ss:$12 sps:$4 sm:$0xff]   ;;  %v3512_v19 = vld [vmem:[%s4627_s23 + $0x64] ss:$12 sps:$4 sm:$0xff]   ;;  %v3514_v20 = vld [vmem:[%s4627_s23 + $0x60] ss:$12 sps:$4 sm:$0xff]  }
 0x16f   : > { %v3515_v21 = vld [vmem:[%s4627_s23 + $0x68] ss:$12 sps:$4 sm:$0xff]   ;;  %v3518_v23 = vld [vmem:[%s4627_s23 + $0x78] ss:$12 sps:$4 sm:$0xff]   ;;  %v3519_v24 = vld [vmem:[%s4627_s23 + $0x80] ss:$12 sps:$4 sm:$0xff]  }
 0x170   : > { %3266 = vmatpush3.bf16.msra.mxu1 %v3503_v8  ;;  %v3516_v22 = vld [vmem:[%s4627_s23 + $0x7c] ss:$12 sps:$4 sm:$0xff]   ;;  %v3520_v25 = vld [vmem:[%s4627_s23 + $0x94] ss:$12 sps:$4 sm:$0xff]   ;;  %v4053_v26 = vmov 0   ;;  %vm4054_vm0 = vmmov 0  }
 0x171   : > { %1112 = vmatpush1.bf16.msra.mxu0 %v3502_v7  ;;  %3267 = vmatprep.subr.bf16.mxu1 %v4052_v4  ;;  %v3522_v27 = vld [vmem:[%s4627_s23 + $0x90] ss:$12 sps:$4 sm:$0xff]   ;;  %v3523_v28 = vld [vmem:[%s4627_s23 + $0x98] ss:$12 sps:$4 sm:$0xff]   ;;  %v3526_v30 = vld [vmem:[%s4627_s23 + $0xa8] ss:$12 sps:$4 sm:$0xff]  }
 0x172   : > { %1113 = vmatprep.subr.bf16.mxu0 %v3504_v9  ;;  %1141 = vmatprep.mubr.bf16.mxu0 %v4053_v26  ;;  %v3524_v29 = vld [vmem:[%s4627_s23 + $0xac] ss:$12 sps:$4 sm:$0xff]   ;;  %v3527_v31 = vld [vmem:[%s4627_s23 + $0xb0] ss:$12 sps:$4 sm:$0xff]   ;;  %s5146_s2 = scalar_lea.vmem [#allocation9], %s4613_s21  ;;  %s5147_s4 = scalar_lea.vmem [#allocation10], %s4613_s21 }
 0x173   : > { %3279 = vmatprep.mubr.msk.bf16.mxu1 %vm4054_vm0, %v4052_v4  ;;  %v3057_v36 = vld [vmem:[%s5146_s2] ss:$0 sm:$0xff]  ;;  %v4730_v43 = vshrl.u32 %v966_v42, 7  ;;  %vm1191_vm1 = vcmask 261120   ;;  %s4055_s10 = smov 96   ;;  %s5148_s12 = scalar_lea.vmem [#allocation7], %s4598_s27 }
 0x174   : > { %3268 = vmatpush3.bf16.msra.mxu1 %v3507_v15  ;;  %v3058_v38 = vld [vmem:[%s5147_s4] ss:$0 sm:$0xff]  ;;  %vm1270_vm2 = vcmask 64512   ;;  %s4056_s29 = smov 64   ;;  %s4057_s30 = smov 32   ;;  %vm1528_vm3 = vcmask 523520  }
 0x175   : > { %1114 = vmatpush1.bf16.msra.mxu0 %v3506_v14  ;;  %3269 = vmatprep.subr.bf16.mxu1 %v4052_v4  ;;  %v972_v44 = vsub.s32 1, %v4730_v43  ;;  %v964_v45 = vld [vmem:[%s4665_s8] sm:$0x7]  ;;  %v968_v46 = vsub.s32 0, %v4730_v43  ;;  %v976_v47 = vsub.s32 2, %v4730_v43  ;;  %vm1701_vm4 = vcmask 785920  }
 0x176   : > { %1115 = vmatprep.subr.bf16.mxu0 %v3508_v16  ;;  %v4761_v63 = vld [vmem:[%s5148_s12] sm:$0xff]  ;;  %vm1874_vm5 = vcmask 1048320  }
 0x177   : > { %v973_v48 = vrot.slane %v964_v45, %v972_v44  ;;  %v969_v51 = vrot.slane %v964_v45, %v968_v46  ;;  %v977_v54 = vrot.slane %v964_v45, %v976_v47 }
 0x178   : > { %3270 = vmatpush3.bf16.msra.mxu1 %v3511_v18 }
 0x179   : > { %1116 = vmatpush1.bf16.msra.mxu0 %v3510_v17  ;;  %3271 = vmatprep.subr.bf16.mxu1 %v4052_v4 }
 0x17a   : > { %1117 = vmatprep.subr.bf16.mxu0 %v3512_v19 }
 0x17c   : > { %3272 = vmatpush3.bf16.msra.mxu1 %v3515_v21 }
 0x17d   : > { %1118 = vmatpush1.bf16.msra.mxu0 %v3514_v20  ;;  %3273 = vmatprep.subr.bf16.mxu1 %v4052_v4 }
 0x17e   : > { %1119 = vmatprep.subr.bf16.mxu0 %v3516_v22 }
 0x180   : > { %3274 = vmatpush3.bf16.msra.mxu1 %v3519_v24 }
 0x181   : > { %1120 = vmatpush1.bf16.msra.mxu0 %v3518_v23  ;;  %3275 = vmatprep.subr.bf16.mxu1 %v4052_v4 }
 0x182   : > { %1121 = vmatprep.subr.bf16.mxu0 %v3520_v25 }
 0x184   : > { %3276 = vmatpush3.bf16.msra.mxu1 %v3523_v28 }
 0x185   : > { %1122 = vmatpush1.bf16.msra.mxu0 %v3522_v27  ;;  %3277 = vmatprep.subr.bf16.mxu1 %v4052_v4 }
 0x186   : > { %1123 = vmatprep.subr.bf16.mxu0 %v3524_v29 }
 0x188   : > { %3278 = vmatpush3.bf16.msra.mxu1 %v3527_v31 }
 0x189   : > { %1124 = vmatpush1.bf16.msra.mxu0 %v3526_v30  ;;  %3283 = vmatprep.subr.mxu1 %v4052_v4 }
 0x18a   : > { %3323 = vmatprep.subr.bf16.mxu0 %v4052_v4 }
 0x1f8   : > { %v906_v10 = vpop.xlane.xlu0 %905 }
 0x1f9   : > { %v908_v11 = vmul.f32 0.0078125, %v906_v10 }
 0x1fb   : > { %v909_v12 = vsub.f32 %v4681_v1, %v908_v11 }
 0x1fd   : > { %v910_v13 = vmul.f32 %v909_v12, %v909_v12 }
 0x1ff   : > { %911 = vadd.xlane.f32.xlu0 %v910_v13 }
 0x28c   : > { %v912_v32 = vpop.xlane.xlu0 %911 }
 0x28d   : > { %v913_v33 = vmul.f32 0.0078125, %v912_v32 }
 0x28f   : > { %v914_v34 = vadd.f32 1e-05, %v913_v33 }
 0x291   : > { %3616 = vrsqrt.f32 %v914_v34 }
 0x29b   : > { %v3617_v35 = vpop.eup %3616 }
 0x29c   : > { %v916_v37 = vmul.f32 %v3617_v35, %v909_v12 }
 0x29e   : > { %v923_v39 = vmul.f32 %v3057_v36, %v916_v37 }
 0x2a0   : > { %v930_v40 = vadd.f32 %v3058_v38, %v923_v39 }
 0x2a2   : > { %v931_v41 = vpack.c.bf16 %v930_v40, %v930_v40 }
 0x2a4   : > { %1142 = vmatmul.mubr.bf16.vlgmr.msra.gmra.mrb[0].mxu0 %v931_v41  ;;  %3280 = vmatmul.mubr.bf16.vlgmr.msra.gmra.mrb[0].mxu1 %v931_v41 }
 0x2a5   : > { %3285 = vmatprep.mubr.msk.f32.mxu1 %vm4054_vm0, %v4052_v4  ;;  %3339 = vmatprep.mubr.msk.bf16.mxu0 %vm4054_vm0, %v4052_v4 }
 0x377   : > { %v1143_v49 = vpop.f32.mrb[0].mxu0  ;;  %v1184_v50 = vpop.f32.mrb[0].mxu1 }
 0x378   : > { %v1145_v52 = vpop.f32.mrb[1].mxu0  ;;  %v3281_v53 = vpop.f32.mrb[1].mxu1  ;;  %v4748_v60 = vadd.f32 %v1143_v49, %v969_v51  ;;  %v4751_v61 = vadd.f32 %v1184_v50, %v977_v54 }
 0x379   : > { %v4742_v55 = vadd.f32 %v1145_v52, %v973_v48  ;;  %v1147_v56 = vpop.f32.mrb[2].mxu0  ;;  %v1187_v57 = vpop.f32.mrb[2].mxu1 }
 0x37a   : > { %v1148_v58 = vpop.f32.mrb[3].mxu0  ;;  %v3282_v59 = vpop.f32.mrb[3].mxu1 }
 0x37b   : > { %1358 = vrot.lane.b32.xlu0 %v4742_v55, %s4055_s10  ;;  %3284 = vmatpush3.xpose.msk.msra.mxu1 %vm1191_vm1, %v4742_v55 }
 0x37c   : > { %3288 = vmatprep.subr.mxu1 %v4052_v4 }
 0x37e   : > { %3286 = vmatmul.mubr.msk.f32.vlgmr.msra.gmra.mrb[4].mxu1 %vm1191_vm1, %v4748_v60 }
 0x37f   : > { %3289 = vmatpush3.msra.mxu1 %v4751_v61  ;;  %3290 = vmatprep.mubr.msk.f32.mxu1 %vm4054_vm0, %v4052_v4 }
 0x380   : > { %3293 = vmatprep.subr.mxu1 %v4052_v4 }
 0x3ed   : > { %v1359_v14 = vpop.permute.xlu0 %1358 }
 0x451   : > { %v1264_v62 = vpop.f32.mrb[4].mxu1 }
 0x452   : > { %v1268_v0 = vmul.f32 0.17677669, %v1264_v62  ;;  %v3287_v2 = vpop.f32.mrb[5].mxu1 }
 0x454   : > { %v1269_v3 = vadd.f32 %v1268_v0, %v4761_v63 }
 0x456   : > { %v1271_v5 = vsel %vm1270_vm2, %v1269_v3, -inf }
 0x457   : > { %1272 = vmax.xlane.f32.xlu1 %v1271_v5 }
 0x4e4   : > { %v1273_v6 = vpop.xlane.xlu1 %1272 }
 0x4e5   : > { %v1274_v7 = vsub.f32 %v1269_v3, %v1273_v6 }
 0x4e7   : > { %v1275_v8 = vmul.f32 1.442695, %v1274_v7 }
 0x4e9   : > { %3618 = vpow2.f32 %v1275_v8 }
 0x4f3   : > { %v3619_v9 = vpop.eup %3618 }
 0x4f4   : > { %v1277_v10 = vsel %vm1270_vm2, %v3619_v9, 0.0 }
 0x4f5   : > { %1278 = vadd.xlane.f32.xlu1 %v1277_v10 }
 0x506   : > { %1356 = vrot.lane.b32.xlu1 %v4748_v60, %s4055_s10 }
 0x582   : > { %v1279_v11 = vpop.xlane.xlu1 %1278 }
 0x583   : > { %3620 = vrcp.f32 %v1279_v11 }
 0x586   : > { %v1357_v15 = vpop.permute.xlu1 %1356 }
 0x58d   : > { %v3621_v12 = vpop.eup %3620 }
 0x58e   : > { %v1281_v13 = vmul.f32 %v3621_v12, %v3619_v9 }
 0x590   : > { %3291 = vmatmul.mubr.msk.f32.vlgmr.msra.gmra.mrb[6].mxu1 %vm1270_vm2, %v1281_v13  ;;  %v3528_v13 = vld [vmem:[%s4629_s16] sm:$0xff]  }
 0x591   : > { %3294 = vmatpush3.xpose.msk.msra.mxu1 %vm1191_vm1, %v1359_v14  ;;  %3295 = vmatprep.mubr.msk.f32.mxu1 %vm4054_vm0, %v4052_v4  ;;  %v3529_v14 = vld [vmem:[%s4629_s16 + $0x8] sm:$0xff]  }
 0x592   : > { %3298 = vmatprep.subr.mxu1 %v4052_v4  ;;  %3324 = vmatpush3.bf16.msra.mxu0 %v3528_v13  ;;  %v3104_v13 = vld [vmem:[%s884_s13] ss:$0 sm:$0xff] }
 0x593   : > { %3325 = vmatprep.subr.bf16.mxu0 %v4052_v4 }
 0x594   : > { %3296 = vmatmul.mubr.msk.f32.vlgmr.msra.gmra.mrb[8].mxu1 %vm1191_vm1, %v1357_v15  ;;  %v3530_v15 = vld [vmem:[%s4629_s16 + $0x10] sm:$0xff]  }
 0x595   : > { %3300 = vmatprep.mubr.msk.f32.mxu1 %vm4054_vm0, %v4052_v4 }
 0x596   : > { %3326 = vmatpush3.bf16.msra.mxu0 %v3529_v14 }
 0x597   : > { %3327 = vmatprep.subr.bf16.mxu0 %v4052_v4 }
 0x59a   : > { %3328 = vmatpush3.bf16.msra.mxu0 %v3530_v15  ;;  %v3105_v15 = vld [vmem:[%s887_s3] ss:$0 sm:$0xff] }
 0x59b   : > { %3329 = vmatprep.subr.bf16.mxu0 %v4052_v4 }
 0x663   : > { %v1351_v16 = vpop.f32.mrb[6].mxu1 }
 0x664   : > { %1355 = vst.msk [vmem:[#allocation3] sm:$0xff] %vm1191_vm1, %v1351_v16  ;;  %v3292_v17 = vpop.f32.mrb[7].mxu1  ;;  %v3531_v16 = vld [vmem:[%s4629_s16 + $0x18] sm:$0xff]  }
 0x665   : > { %3330 = vmatpush3.bf16.msra.mxu0 %v3531_v16  ;;  %v3532_v17 = vld [vmem:[%s4629_s16 + $0x20] sm:$0xff]  }
 0x666   : > { %3331 = vmatprep.subr.bf16.mxu0 %v4052_v4 }
 0x667   : > { %v1430_v18 = vpop.f32.mrb[8].mxu1 }
 0x668   : > { %v1434_v19 = vmul.f32 0.17677669, %v1430_v18  ;;  %v3297_v20 = vpop.f32.mrb[9].mxu1  ;;  %v3533_v18 = vld [vmem:[%s4629_s16 + $0x28] sm:$0xff]  }
 0x669   : > { %3332 = vmatpush3.bf16.msra.mxu0 %v3532_v17  ;;  %v3535_v20 = vld [vmem:[%s4629_s16 + $0x38] sm:$0xff]  }
 0x66a   : > { %v1435_v21 = vadd.f32 %v1434_v19, %v4761_v63  ;;  %3333 = vmatprep.subr.bf16.mxu0 %v4052_v4  ;;  %v3534_v19 = vld [vmem:[%s4629_s16 + $0x30] sm:$0xff]  }
 0x66c   : > { %v1436_v22 = vsel %vm1270_vm2, %v1435_v21, -inf }
 0x66d   : > { %1437 = vmax.xlane.f32.xlu1 %v1436_v22  ;;  %3334 = vmatpush3.bf16.msra.mxu0 %v3533_v18 }
 0x66e   : > { %3335 = vmatprep.subr.bf16.mxu0 %v4052_v4 }
 0x671   : > { %3336 = vmatpush3.bf16.msra.mxu0 %v3534_v19  ;;  %v3584_v19 = vld [vmem:[%s4639_s6 + $0x40] sm:$0xff]  }
 0x672   : > { %3337 = vmatprep.subr.bf16.mxu0 %v4052_v4 }
 0x675   : > { %3338 = vmatpush3.bf16.msra.mxu0 %v3535_v20  ;;  %v3585_v20 = vld [vmem:[%s4639_s6 + $0xc0] sm:$0xff]  }
 0x67e   : > { %1532 = vrot.lane.b32.xlu1 %v4742_v55, %s4056_s29 }
 0x682   : > { %1530 = vrot.lane.b32.xlu1 %v4748_v60, %s4056_s29 }
 0x6fa   : > { %v1438_v23 = vpop.xlane.xlu1 %1437 }
 0x6fb   : > { %v1439_v24 = vsub.f32 %v1435_v21, %v1438_v23 }
 0x6fd   : > { %v1440_v25 = vmul.f32 1.442695, %v1439_v24 }
 0x6fe   : > { %v1533_v32 = vpop.permute.xlu1 %1532 }
 0x6ff   : > { %3622 = vpow2.f32 %v1440_v25 }
 0x702   : > { %v1531_v34 = vpop.permute.xlu1 %1530 }
 0x709   : > { %v3623_v27 = vpop.eup %3622 }
 0x70a   : > { %v1442_v28 = vsel %vm1270_vm2, %v3623_v27, 0.0 }
 0x70b   : > { %1443 = vadd.xlane.f32.xlu0 %v1442_v28 }
 0x721   : > { %1448 = vrot.lane.b32.xlu0 %v4751_v61, %s4055_s10 }
 0x798   : > { %v1444_v29 = vpop.xlane.xlu0 %1443 }
 0x799   : > { %3624 = vrcp.f32 %v1444_v29 }
 0x79c   : > { %v1449_v30 = vpop.permute.xlu0 %1448 }
 0x79d   : > { %3299 = vmatpush3.msra.mxu1 %v1449_v30 }
 0x79e   : > { %3303 = vmatprep.subr.mxu1 %v4052_v4 }
 0x7a3   : > { %v3625_v31 = vpop.eup %3624 }
 0x7a4   : > { %v1446_v33 = vmul.f32 %v3625_v31, %v3623_v27 }
 0x7a6   : > { %3301 = vmatmul.mubr.msk.f32.vlgmr.msra.gmra.mrb[10].mxu1 %vm1270_vm2, %v1446_v33  ;;  %v3538_v33 = vld [vmem:[%s4636_s9 + $0x4] ss:$16 sps:$4 sm:$0xff]  }
 0x7a7   : > { %3304 = vmatpush3.xpose.msk.msra.mxu1 %vm1191_vm1, %v1533_v32  ;;  %3305 = vmatprep.mubr.msk.f32.mxu1 %vm4054_vm0, %v4052_v4 }
 0x7a8   : > { %3308 = vmatprep.subr.mxu1 %v4052_v4 }
 0x7aa   : > { %3306 = vmatmul.mubr.msk.f32.vlgmr.msra.gmra.mrb[12].mxu1 %vm1191_vm1, %v1531_v34  ;;  %v3539_v34 = vld [vmem:[%s4636_s9 + $0x8] ss:$16 sps:$4 sm:$0xff]  }
 0x7ab   : > { %3310 = vmatprep.mubr.msk.f32.mxu1 %vm4054_vm0, %v4052_v4 }
 0x879   : > { %v1520_v35 = vpop.f32.mrb[10].mxu1 }
 0x87a   : > { %v3302_v36 = vpop.f32.mrb[11].mxu1 }
 0x87b   : > { %v3544_v36 = vld [vmem:[%s4636_s9 + $0x24] ss:$16 sps:$4 sm:$0xff]  }
 0x87d   : > { %v1604_v37 = vpop.f32.mrb[12].mxu1 }
 0x87e   : > { %v1608_v38 = vmul.f32 0.17677669, %v1604_v37  ;;  %v3307_v39 = vpop.f32.mrb[13].mxu1  ;;  %v3547_v37 = vld [vmem:[%s4636_s9 + $0x2c] ss:$16 sps:$4 sm:$0xff]  }
 0x87f   : > { %v3550_v39 = vld [vmem:[%s4636_s9 + $0x44] ss:$16 sps:$4 sm:$0xff]  }
 0x880   : > { %v1609_v40 = vadd.f32 %v1608_v38, %v4761_v63  ;;  %v3542_v38 = vld [vmem:[%s4636_s9 + $0x20] ss:$16 sps:$4 sm:$0xff]  }
 0x882   : > { %v1610_v41 = vsel %vm1270_vm2, %v1609_v40, -inf }
 0x883   : > { %1611 = vmax.xlane.f32.xlu1 %v1610_v41  ;;  %v3548_v41 = vld [vmem:[%s4636_s9 + $0x40] ss:$16 sps:$4 sm:$0xff]  }
 0x894   : > { %1705 = vrot.lane.b32.xlu1 %v4742_v55, %s4057_s30 }
 0x898   : > { %1703 = vrot.lane.b32.xlu1 %v4748_v60, %s4057_s30 }
 0x910   : > { %v1612_v42 = vpop.xlane.xlu1 %1611 }
 0x911   : > { %v1613_v45 = vsub.f32 %v1609_v40, %v1612_v42  ;;  %v3553_v40 = vld [vmem:[%s4636_s9 + $0x4c] ss:$16 sps:$4 sm:$0xff]   ;;  %v3551_v42 = vld [vmem:[%s4636_s9 + $0x48] ss:$16 sps:$4 sm:$0xff]  }
 0x913   : > { %v1614_v48 = vmul.f32 1.442695, %v1613_v45 }
 0x914   : > { %v1706_v54 = vpop.permute.xlu1 %1705 }
 0x915   : > { %3626 = vpow2.f32 %v1614_v48 }
 0x918   : > { %v1704_v56 = vpop.permute.xlu1 %1703 }
 0x91f   : > { %v3627_v49 = vpop.eup %3626 }
 0x920   : > { %v1616_v50 = vsel %vm1270_vm2, %v3627_v49, 0.0 }
 0x921   : > { %1617 = vadd.xlane.f32.xlu0 %v1616_v50 }
 0x937   : > { %1621 = vrot.lane.b32.xlu0 %v4751_v61, %s4056_s29 }
 0x9ae   : > { %v1618_v51 = vpop.xlane.xlu0 %1617 }
 0x9af   : > { %3628 = vrcp.f32 %v1618_v51  ;;  %v3556_v51 = vld [vmem:[%s4636_s9 + $0x64] ss:$16 sps:$4 sm:$0xff]  }
 0x9b2   : > { %v1622_v52 = vpop.permute.xlu0 %1621 }
 0x9b3   : > { %3309 = vmatpush3.msra.mxu1 %v1622_v52  ;;  %v3559_v52 = vld [vmem:[%s4636_s9 + $0x6c] ss:$16 sps:$4 sm:$0xff]  }
 0x9b4   : > { %3313 = vmatprep.subr.mxu1 %v4052_v4 }
 0x9b9   : > { %v3629_v53 = vpop.eup %3628 }
 0x9ba   : > { %v1620_v55 = vmul.f32 %v3629_v53, %v3627_v49  ;;  %v3554_v53 = vld [vmem:[%s4636_s9 + $0x60] ss:$16 sps:$4 sm:$0xff]  }
 0x9bc   : > { %3311 = vmatmul.mubr.msk.f32.vlgmr.msra.gmra.mrb[14].mxu1 %vm1270_vm2, %v1620_v55  ;;  %v3562_v55 = vld [vmem:[%s4636_s9 + $0x84] ss:$16 sps:$4 sm:$0xff]  }
 0x9bd   : > { %3314 = vmatpush3.xpose.msk.msra.mxu1 %vm1191_vm1, %v1706_v54  ;;  %3315 = vmatprep.mubr.msk.f32.mxu1 %vm4054_vm0, %v4052_v4  ;;  %v3557_v54 = vld [vmem:[%s4636_s9 + $0x68] ss:$16 sps:$4 sm:$0xff]  }
 0x9be   : > { %3318 = vmatprep.subr.mxu1 %v4052_v4 }
 0x9c0   : > { %3316 = vmatmul.mubr.msk.f32.vlgmr.msra.gmra.mrb[16].mxu1 %vm1191_vm1, %v1704_v56  ;;  %v3565_v56 = vld [vmem:[%s4636_s9 + $0x8c] ss:$16 sps:$4 sm:$0xff]  }
 0x9c1   : > { %3320 = vmatprep.mubr.msk.f32.mxu1 %vm4054_vm0, %v4052_v4  ;;  %v3095_v4 = vld [vmem:[%s881_s1] ss:$0 sm:$0xff]  ;;  %s5153_s1 = sld [smem:[#allocation31_spill]] }
 0x9c7   : > { %p3175_p0 = scmp.ne.s32.totalorder %s5153_s1, 1 }
 0x9c8   : > { %s5154_s13 = sld [smem:[#allocation60_spill]] (!%p3175_p0)  ;;  %s5155_s0 = sld [smem:[#allocation61_spill]] (!%p3175_p0) }
 0xa8f   : > { %v1693_v57 = vpop.f32.mrb[14].mxu1 }
 0xa90   : > { %v3312_v58 = vpop.f32.mrb[15].mxu1 }
 0xa91   : > { %v3563_v58 = vld [vmem:[%s4636_s9 + $0x88] ss:$16 sps:$4 sm:$0xff]  }
 0xa93   : > { %v1777_v59 = vpop.f32.mrb[16].mxu1 }
 0xa94   : > { %v1781_v60 = vmul.f32 0.17677669, %v1777_v59  ;;  %v3317_v62 = vpop.f32.mrb[17].mxu1  ;;  %v3568_v59 = vld [vmem:[%s4636_s9 + $0xa4] ss:$16 sps:$4 sm:$0xff]  }
 0xa95   : > { %v3566_v62 = vld [vmem:[%s4636_s9 + $0xa0] ss:$16 sps:$4 sm:$0xff]  }
 0xa96   : > { %v1782_v0 = vadd.f32 %v1781_v60, %v4761_v63  ;;  %v3571_v60 = vld [vmem:[%s4636_s9 + $0xac] ss:$16 sps:$4 sm:$0xff]  }
 0xa98   : > { %v1783_v2 = vsel %vm1270_vm2, %v1782_v0, -inf }
 0xa99   : > { %1784 = vmax.xlane.f32.xlu0 %v1783_v2  ;;  %v3574_v2 = vld [vmem:[%s4636_s9 + $0xc4] ss:$16 sps:$4 sm:$0xff]  }
 0xaaf   : > { %1794 = vrot.lane.b32.xlu0 %v4751_v61, %s4057_s30 }
 0xab3   : > { %1698 = vrot.lane.b32.xlu0 %v1693_v57, %s4056_s29  ;;  %v3560_v57 = vld [vmem:[%s4636_s9 + $0x80] ss:$16 sps:$4 sm:$0xff]  }
 0xb26   : > { %v1785_v3 = vpop.xlane.xlu0 %1784 }
 0xb27   : > { %v1786_v5 = vsub.f32 %v1782_v0, %v1785_v3  ;;  %v3569_v0 = vld [vmem:[%s4636_s9 + $0xa8] ss:$16 sps:$4 sm:$0xff]   ;;  %v3577_v3 = vld [vmem:[%s4636_s9 + $0xcc] ss:$16 sps:$4 sm:$0xff]  }
 0xb29   : > { %v1787_v6 = vmul.f32 1.442695, %v1786_v5  ;;  %v3572_v5 = vld [vmem:[%s4636_s9 + $0xc0] ss:$16 sps:$4 sm:$0xff]  }
 0xb2a   : > { %v1795_v7 = vpop.permute.xlu0 %1794 }
 0xb2b   : > { %3630 = vpow2.f32 %v1787_v6  ;;  %3319 = vmatpush3.msra.mxu1 %v1795_v7  ;;  %v3575_v6 = vld [vmem:[%s4636_s9 + $0xc8] ss:$16 sps:$4 sm:$0xff]   ;;  %v3580_v7 = vld [vmem:[%s4636_s9 + $0xe4] ss:$16 sps:$4 sm:$0xff]  }
 0xb2c   : > { %2232 = vmatprep.subr.bf16.mxu1 %v3538_v33  ;;  %v3598_v33 = vld [vmem:[%s4639_s6 + $0x18] sm:$0xff]  }
 0xb2e   : > { %v1699_v10 = vpop.permute.xlu0 %1698 }
 0xb35   : > { %v3631_v8 = vpop.eup %3630 }
 0xb36   : > { %v1789_v9 = vsel %vm1270_vm2, %v3631_v8, 0.0 }
 0xb37   : > { %1790 = vadd.xlane.f32.xlu1 %v1789_v9  ;;  %v3578_v9 = vld [vmem:[%s4636_s9 + $0xe0] ss:$16 sps:$4 sm:$0xff]  }
 0xb48   : > { %1525 = vrot.lane.b32.xlu1 %v1520_v35, %s4057_s30  ;;  %v3541_v35 = vld [vmem:[%s4636_s9 + $0xc] ss:$16 sps:$4 sm:$0xff]  }
 0xb49   : > { %2273 = vmatprep.subr.bf16.mxu0 %v3541_v35  ;;  %v3600_v35 = vld [vmem:[%s4639_s6 + $0x60] sm:$0xff]  }
 0xbc4   : > { %v1791_v63 = vpop.xlane.xlu1 %1790 }
 0xbc5   : > { %3632 = vrcp.f32 %v1791_v63  ;;  %v3581_v63 = vld [vmem:[%s4636_s9 + $0xe8] ss:$16 sps:$4 sm:$0xff]  }
 0xbc8   : > { %v1526_v61 = vpop.permute.xlu1 %1525 }
 0xbc9   : > { %1529 = vst.msk [vmem:[#allocation3] sm:$0xff] %vm1528_vm3, %v1526_v61 }
 0xbca   : > { %1702 = vst.msk [vmem:[#allocation3] sm:$0xff] %vm1701_vm4, %v1699_v10 }
 0xbcf   : > { %v3633_v11 = vpop.eup %3632 }
 0xbd0   : > { %v1793_v12 = vmul.f32 %v3633_v11, %v3631_v8  ;;  %v3583_v8 = vld [vmem:[%s4636_s9 + $0xec] ss:$16 sps:$4 sm:$0xff]  }
 0xbd2   : > { %3321 = vmatmul.mubr.msk.f32.vlgmr.msra.gmra.mrb[18].mxu1 %vm1270_vm2, %v1793_v12 }
 0xbd3   : > { %2264 = vmatprep.mubr.bf16.mxu1 %v4053_v26 }
 0xca5   : > { %v1866_v21 = vpop.f32.mrb[18].mxu1 }
 0xca6   : > { %1871 = vrot.lane.b32.xlu1 %v1866_v21, %s4055_s10  ;;  %v3322_v22 = vpop.f32.mrb[19].mxu1  ;;  %v3586_v21 = vld [vmem:[%s4639_s6] sm:$0xff]  }
 0xca7   : > { %v3587_v22 = vld [vmem:[%s4639_s6 + $0x80] sm:$0xff]  }
 0xd18   : > { %v1872_v23 = vpop.permute.xlu1 %1871 }
 0xd19   : > { %1875 = vst.msk [vmem:[#allocation3] sm:$0xff] %vm1874_vm5, %v1872_v23  ;;  %v3588_v23 = vld [vmem:[%s4639_s6 + $0x48] sm:$0xff]  }
 0xd20   : > { %v1876_v24 = vld [vmem:[#allocation3] sm:$0xff] }
 0xd21   : > { %v1877_v25 = vpack.c.bf16 %v1876_v24, %v1876_v24  ;;  %v3589_v24 = vld [vmem:[%s4639_s6 + $0xc8] sm:$0xff]  }
 0xd23   : > { %3340 = vmatmul.mubr.bf16.vlgmr.msra.gmra.mrb[4].mxu0 %v1877_v25  ;;  %v3590_v25 = vld [vmem:[%s4639_s6 + $0x8] sm:$0xff]  }
 0xd24   : > { %2305 = vmatprep.mubr.bf16.mxu0 %v4053_v26  ;;  %v3536_v26 = vld [vmem:[%s4636_s9] ss:$16 sps:$4 sm:$0xff]   ;;  %2274 = vmatpush1.bf16.msra.mxu0 %v3539_v34  ;;  %v3599_v34 = vld [vmem:[%s4639_s6 + $0x98] sm:$0xff]  }
 0xd25   : > { %2233 = vmatpush1.bf16.msra.mxu1 %v3536_v26  ;;  %2275 = vmatprep.subr.bf16.mxu0 %v3547_v37  ;;  %v3597_v26 = vld [vmem:[%s4639_s6 + $0xd8] sm:$0xff]   ;;  %v3602_v37 = vld [vmem:[%s4639_s6 + $0x20] sm:$0xff]  }
 0xd26   : > { %2234 = vmatprep.subr.bf16.mxu1 %v3544_v36  ;;  %v3601_v36 = vld [vmem:[%s4639_s6 + $0xe0] sm:$0xff]  }
 0xd29   : > { %2235 = vmatpush1.bf16.msra.mxu1 %v3542_v38  ;;  %v3603_v38 = vld [vmem:[%s4639_s6 + $0xa0] sm:$0xff]  }
 0xd2a   : > { %2236 = vmatprep.subr.bf16.mxu1 %v3550_v39  ;;  %v3605_v39 = vld [vmem:[%s4639_s6 + $0xe8] sm:$0xff]  }
 0xd2d   : > { %2237 = vmatpush1.bf16.msra.mxu1 %v3548_v41  ;;  %v3607_v41 = vld [vmem:[%s4639_s6 + $0xa8] sm:$0xff]  }
 0xd2e   : > { %2238 = vmatprep.subr.bf16.mxu1 %v3556_v51  ;;  %v3613_v51 = vld [vmem:[%s4639_s6 + $0xf8] sm:$0xff]  }
 0xd31   : > { %2239 = vmatpush1.bf16.msra.mxu1 %v3554_v53  ;;  %v3615_v53 = vld [vmem:[%s4639_s6 + $0xb8] sm:$0xff]  }
 0xd32   : > { %2240 = vmatprep.subr.bf16.mxu1 %v3562_v55  ;;  %v2066_v55 = vsub.s32 3, %v4730_v43 }
 0xd35   : > { %2241 = vmatpush1.bf16.msra.mxu1 %v3560_v57 }
 0xd36   : > { %2242 = vmatprep.subr.bf16.mxu1 %v3568_v59 }
 0xd39   : > { %2243 = vmatpush1.bf16.msra.mxu1 %v3566_v62 }
 0xd3a   : > { %2244 = vmatprep.subr.bf16.mxu1 %v3574_v2 }
 0xd3d   : > { %2245 = vmatpush1.bf16.msra.mxu1 %v3572_v5 }
 0xd3e   : > { %2246 = vmatprep.subr.bf16.mxu1 %v3580_v7 }
 0xd41   : > { %2247 = vmatpush1.bf16.msra.mxu1 %v3578_v9 }
 0xd42   : > { %3219 = vmatprep.subr.bf16.mxu1 %v3584_v19 }
 0xdf6   : > { %v1983_v27 = vpop.f32.mrb[4].mxu0 }
 0xdf7   : > { %v1984_v28 = vadd.f32 %v3095_v4, %v1983_v27  ;;  %v3341_v29 = vpop.f32.mrb[5].mxu0  ;;  %v3591_v4 = vld [vmem:[%s4639_s6 + $0x88] sm:$0xff]   ;;  %v3592_v27 = vld [vmem:[%s4639_s6 + $0x50] sm:$0xff]  }
 0xdf8   : > { %v1986_v30 = vpop.f32.mrb[6].mxu0  ;;  %v3594_v29 = vld [vmem:[%s4639_s6 + $0x10] sm:$0xff]  }
 0xdf9   : > { %v4845_v31 = vadd.f32 %v1984_v28, %v4681_v1  ;;  %v3342_v32 = vpop.f32.mrb[7].mxu0  ;;  %v3545_v1 = vld [vmem:[%s4636_s9 + $0x28] ss:$16 sps:$4 sm:$0xff]   ;;  %v3593_v28 = vld [vmem:[%s4639_s6 + $0xd0] sm:$0xff]  }
 0xdfa   : > { %2276 = vmatpush1.bf16.msra.mxu0 %v3545_v1  ;;  %v3595_v30 = vld [vmem:[%s4639_s6 + $0x90] sm:$0xff]   ;;  %v3596_v32 = vld [vmem:[%s4639_s6 + $0x58] sm:$0xff]   ;;  %v3604_v1 = vld [vmem:[%s4639_s6 + $0x68] sm:$0xff]  }
 0xdfb   : > { %1992 = vadd.xlane.f32.xlu0 %v4845_v31  ;;  %2277 = vmatprep.subr.bf16.mxu0 %v3553_v40  ;;  %v3606_v40 = vld [vmem:[%s4639_s6 + $0x28] sm:$0xff]  }
 0xdfe   : > { %2278 = vmatpush1.bf16.msra.mxu0 %v3551_v42  ;;  %v3608_v42 = vld [vmem:[%s4639_s6 + $0x70] sm:$0xff]  }
 0xdff   : > { %2279 = vmatprep.subr.bf16.mxu0 %v3559_v52  ;;  %v3614_v52 = vld [vmem:[%s4639_s6 + $0x38] sm:$0xff]  }
 0xe02   : > { %2280 = vmatpush1.bf16.msra.mxu0 %v3557_v54  ;;  %v2050_v54 = vld [vmem:[%s4671_s26] sm:$0xf] }
 0xe03   : > { %2281 = vmatprep.subr.bf16.mxu0 %v3565_v56  ;;  %v2055_v56 = vrot.slane %v2050_v54, %v968_v46  ;;  %v2063_v57 = vrot.slane %v2050_v54, %v976_v47  ;;  %v2067_v59 = vrot.slane %v2050_v54, %v2066_v55 }
 0xe06   : > { %2282 = vmatpush1.bf16.msra.mxu0 %v3563_v58  ;;  %v2059_v58 = vrot.slane %v2050_v54, %v972_v44 }
 0xe07   : > { %2283 = vmatprep.subr.bf16.mxu0 %v3571_v60 }
 0xe0a   : > { %2284 = vmatpush1.bf16.msra.mxu0 %v3569_v0 }
 0xe0b   : > { %2285 = vmatprep.subr.bf16.mxu0 %v3577_v3 }
 0xe0e   : > { %2286 = vmatpush1.bf16.msra.mxu0 %v3575_v6 }
 0xe0f   : > { %2287 = vmatprep.subr.bf16.mxu0 %v3583_v8 }
 0xe12   : > { %2288 = vmatpush1.bf16.msra.mxu0 %v3581_v63 }
 0xe13   : > { %3241 = vmatprep.subr.bf16.mxu0 %v3585_v20 }
 0xe88   : > { %v1993_v45 = vpop.xlane.xlu0 %1992 }
 0xe89   : > { %v1994_v48 = vmul.f32 0.0078125, %v1993_v45  ;;  %v3609_v45 = vld [vmem:[%s4639_s6 + $0xf0] sm:$0xff]  }
 0xe8b   : > { %v1995_v49 = vsub.f32 %v4845_v31, %v1994_v48  ;;  %v3610_v48 = vld [vmem:[%s4639_s6 + $0x30] sm:$0xff]  }
 0xe8d   : > { %v1996_v50 = vmul.f32 %v1995_v49, %v1995_v49 }
 0xe8f   : > { %1997 = vadd.xlane.f32.xlu1 %v1996_v50  ;;  %v3612_v50 = vld [vmem:[%s4639_s6 + $0x78] sm:$0xff]  }
 0xf1c   : > { %v1998_v61 = vpop.xlane.xlu1 %1997 }
 0xf1d   : > { %v1999_v10 = vmul.f32 0.0078125, %v1998_v61 }
 0xf1f   : > { %v2000_v11 = vadd.f32 1e-05, %v1999_v10 }
 0xf21   : > { %3634 = vrsqrt.f32 %v2000_v11 }
 0xf2b   : > { %v3635_v12 = vpop.eup %3634 }
 0xf2c   : > { %v2002_v14 = vmul.f32 %v3635_v12, %v1995_v49  ;;  %v3611_v49 = vld [vmem:[%s4639_s6 + $0xb0] sm:$0xff]  }
 0xf2e   : > { %v2009_v16 = vmul.f32 %v3104_v13, %v2002_v14 }
 0xf30   : > { %v2016_v17 = vadd.f32 %v3105_v15, %v2009_v16 }
 0xf32   : > { %v2017_v18 = vpack.c.bf16 %v2016_v17, %v2016_v17 }
 0xf34   : > { %2265 = vmatmul.mubr.bf16.vlgmr.msra.gmra.mrb[20].mxu1 %v2017_v18  ;;  %2306 = vmatmul.mubr.bf16.vlgmr.msra.gmra.mrb[8].mxu0 %v2017_v18 }
 0xf35   : > { %3220 = vmatpush3.bf16.msra.mxu1 %v3586_v21  ;;  %3242 = vmatpush3.bf16.msra.mxu0 %v3587_v22 }
 0xf36   : > { %3221 = vmatprep.subr.bf16.mxu1 %v3588_v23  ;;  %3243 = vmatprep.subr.bf16.mxu0 %v3589_v24 }
 0xf39   : > { %3222 = vmatpush3.bf16.msra.mxu1 %v3590_v25  ;;  %3244 = vmatpush3.bf16.msra.mxu0 %v3591_v4 }
 0xf3a   : > { %3223 = vmatprep.subr.bf16.mxu1 %v3592_v27  ;;  %3245 = vmatprep.subr.bf16.mxu0 %v3593_v28 }
 0xf3d   : > { %3224 = vmatpush3.bf16.msra.mxu1 %v3594_v29  ;;  %3246 = vmatpush3.bf16.msra.mxu0 %v3595_v30 }
 0xf3e   : > { %3225 = vmatprep.subr.bf16.mxu1 %v3596_v32  ;;  %3247 = vmatprep.subr.bf16.mxu0 %v3597_v26 }
 0xf41   : > { %3226 = vmatpush3.bf16.msra.mxu1 %v3598_v33  ;;  %3248 = vmatpush3.bf16.msra.mxu0 %v3599_v34 }
 0xf42   : > { %3227 = vmatprep.subr.bf16.mxu1 %v3600_v35  ;;  %3249 = vmatprep.subr.bf16.mxu0 %v3601_v36  ;;  %v3142_v36 = vld [vmem:[%s894_s28] ss:$0 sm:$0xff] }
 0xf45   : > { %3228 = vmatpush3.bf16.msra.mxu1 %v3602_v37  ;;  %3250 = vmatpush3.bf16.msra.mxu0 %v3603_v38 }
 0xf46   : > { %3229 = vmatprep.subr.bf16.mxu1 %v3604_v1  ;;  %3251 = vmatprep.subr.bf16.mxu0 %v3605_v39 }
 0xf49   : > { %3230 = vmatpush3.bf16.msra.mxu1 %v3606_v40  ;;  %3252 = vmatpush3.bf16.msra.mxu0 %v3607_v41 }
 0xf4a   : > { %3231 = vmatprep.subr.bf16.mxu1 %v3608_v42  ;;  %3253 = vmatprep.subr.bf16.mxu0 %v3609_v45 }
 0xf4d   : > { %3232 = vmatpush3.bf16.msra.mxu1 %v3610_v48  ;;  %3254 = vmatpush3.bf16.msra.mxu0 %v3611_v49 }
 0xf4e   : > { %3233 = vmatprep.subr.bf16.mxu1 %v3612_v50  ;;  %3255 = vmatprep.subr.bf16.mxu0 %v3613_v51 }
 0xf51   : > { %3234 = vmatpush3.bf16.msra.mxu1 %v3614_v52  ;;  %3256 = vmatpush3.bf16.msra.mxu0 %v3615_v53 }
0x1007   : > { %v2266_v60 = vpop.f32.mrb[20].mxu1  ;;  %v2307_v62 = vpop.f32.mrb[8].mxu0 }
0x1008   : > { %v2267_v0 = vadd.f32 %v2266_v60, %v2055_v56  ;;  %v2308_v2 = vadd.f32 %v2307_v62, %v2063_v57  ;;  %v2268_v3 = vpop.f32.mrb[21].mxu1  ;;  %v2309_v5 = vpop.f32.mrb[9].mxu0  ;;  %v3177_v60 = vld [vmem:[%s5155_s0] ss:$0 sm:$0xff] (!%p3175_p0) }
0x1009   : > { %v2269_v6 = vadd.f32 %v2268_v3, %v2059_v58  ;;  %v2310_v7 = vadd.f32 %v2309_v5, %v2067_v59  ;;  %v2270_v8 = vpop.f32.mrb[22].mxu1  ;;  %v2311_v9 = vpop.f32.mrb[10].mxu0 }
0x100a   : > { %v3138_v63 = vmul.f32 -1.702, %v2267_v0  ;;  %v3140_v61 = vmul.f32 -1.702, %v2308_v2  ;;  %v2271_v46 = vpop.f32.mrb[23].mxu1  ;;  %v2312_v10 = vpop.f32.mrb[11].mxu0 }
0x100b   : > { %v3139_v11 = vmul.f32 -1.702, %v2269_v6  ;;  %v3141_v47 = vmul.f32 -1.702, %v2310_v7 }
0x100c   : > { %v2322_v12 = vmul.f32 1.442695, %v3138_v63  ;;  %v2326_v43 = vmul.f32 1.442695, %v3140_v61 }
0x100d   : > { %v2324_v44 = vmul.f32 1.442695, %v3139_v11  ;;  %v2328_v13 = vmul.f32 1.442695, %v3141_v47 }
0x100e   : > { %3636 = vpow2.f32 %v2322_v12 }
0x100f   : > { %3638 = vpow2.f32 %v2326_v43 }
0x1010   : > { %3640 = vpow2.f32 %v2324_v44 }
0x1011   : > { %3642 = vpow2.f32 %v2328_v13 }
0x1018   : > { %v3637_v14 = vpop.eup %3636 }
0x1019   : > { %v3639_v15 = vpop.eup %3638  ;;  %v2330_v16 = vadd.f32 1.0, %v3637_v14 }
0x101a   : > { %v3641_v17 = vpop.eup %3640  ;;  %v2332_v18 = vadd.f32 1.0, %v3639_v15 }
0x101b   : > { %v3643_v19 = vpop.eup %3642  ;;  %3644 = vrcp.f32 %v2330_v16  ;;  %v2331_v20 = vadd.f32 1.0, %v3641_v17 }
0x101c   : > { %3646 = vrcp.f32 %v2332_v18  ;;  %v2333_v21 = vadd.f32 1.0, %v3643_v19 }
0x101d   : > { %3648 = vrcp.f32 %v2331_v20 }
0x101e   : > { %3650 = vrcp.f32 %v2333_v21 }
0x1025   : > { %v3645_v22 = vpop.eup %3644 }
0x1026   : > { %v3647_v23 = vpop.eup %3646  ;;  %v2342_v25 = vmul.f32 %v3645_v22, %v2267_v0 }
0x1027   : > { %v3649_v24 = vpop.eup %3648  ;;  %v2344_v27 = vmul.f32 %v3647_v23, %v2308_v2 }
0x1028   : > { %v3651_v4 = vpop.eup %3650  ;;  %v2343_v28 = vmul.f32 %v3649_v24, %v2269_v6  ;;  %v2346_v32 = vpack.c.bf16 %v2342_v25, %v2342_v25 }
0x1029   : > { %v2345_v29 = vmul.f32 %v3651_v4, %v2310_v7  ;;  %v2348_v33 = vpack.c.bf16 %v2344_v27, %v2344_v27 }
0x102a   : > { %v2347_v30 = vpack.c.bf16 %v2343_v28, %v2343_v28 }
0x102b   : > { %v2349_v26 = vpack.c.bf16 %v2345_v29, %v2345_v29 }
0x102c   : > { %2645 = vmatprep.mubr.bf16.mxu1 %v2347_v30 }
0x102d   : > { %2685 = vmatprep.mubr.bf16.mxu0 %v2349_v26  ;;  %2646 = vmatmul.mubr.bf16.vlgmr.msra.gmra.mrb[24].mxu1 %v2346_v32 }
0x102e   : > { %2686 = vmatmul.mubr.bf16.vlgmr.msra.gmra.mrb[12].mxu0 %v2348_v33 }
0x1100   : > { %v3235_v34 = vpop.f32.mrb[24].mxu1 }
0x1101   : > { %v3257_v35 = vpop.f32.mrb[12].mxu0  ;;  %v3236_v37 = vpop.f32.mrb[25].mxu1 }
0x1102   : > { %v3237_v38 = vadd.f32 %v3236_v37, %v3235_v34  ;;  %v3258_v1 = vpop.f32.mrb[13].mxu0  ;;  %v3238_v39 = vpop.f32.mrb[26].mxu1 }
0x1103   : > { %v3259_v40 = vadd.f32 %v3258_v1, %v3257_v35  ;;  %v3260_v41 = vpop.f32.mrb[14].mxu0  ;;  %v3239_v42 = vpop.f32.mrb[27].mxu1 }
0x1104   : > { %v2648_v45 = vadd.f32 %v3237_v38, %v3142_v36  ;;  %v3261_v48 = vpop.f32.mrb[15].mxu0  ;;  %2698 = sbr.rel (%p3175_p0) target bundleno = 4674 (0x1242), region = 124 }
0x1106   : > { %v2688_v49 = vadd.f32 %v3259_v40, %v2648_v45 }
0x1108   : > { %v2693_v50 = vadd.f32 %v2688_v49, %v4845_v31  ;;  %v3176_v31 = vld [vmem:[%s5154_s13] ss:$0 sm:$0xff] (!%p3175_p0) }
0x110a   : > { %2694 = vst [vmem:[#allocation2] sm:$0xff] %v2693_v50  ;;  %2701 = vadd.xlane.f32.xlu0 (!%p3175_p0), %v2693_v50 }
0x1197   : > { %v2702_v51 = vpop.xlane.xlu0 %2701 }
0x1198   : > { %v2703_v52 = vmul.f32 0.0078125, %v2702_v51 }
0x119a   : > { %v2704_v53 = vsub.f32 %v2693_v50, %v2703_v52 }
0x119c   : > { %v2705_v54 = vmul.f32 %v2704_v53, %v2704_v53 }
0x119e   : > { %2706 = vadd.xlane.f32.xlu0 %v2705_v54 }
0x122b   : > { %v2707_v55 = vpop.xlane.xlu0 %2706 }
0x122c   : > { %v2708_v56 = vmul.f32 0.0078125, %v2707_v55 }
0x122e   : > { %v2709_v57 = vadd.f32 1e-05, %v2708_v56 }
0x1230   : > { %3652 = vrsqrt.f32 %v2709_v57 }
0x123a   : > { %v3653_v58 = vpop.eup %3652 }
0x123b   : > { %v2711_v59 = vmul.f32 %v3653_v58, %v2704_v53 }
0x123d   : > { %v2718_v62 = vmul.f32 %v3176_v31, %v2711_v59 }
0x123f   : > { %v2725_v0 = vadd.f32 %v3177_v60, %v2718_v62 }
0x1241   : > { %2726 = vst [vmem:[%s874_s17] sm:$0xff] %v2725_v0 }
0x1242 PF: > { %s5156_s5 = sld [smem:[#allocation32_spill]]  ;;  %s5157_s28 = sld [smem:[#allocation43_spill]] }
0x1243   : > { %s5158_s10 = sld [smem:[#allocation62_spill]]  ;;  %s2741_s29 = sshll.u32 %s874_s17, 4  ;;  %s2742_s29 = int_to_ptr.vmem [resolvable:$true] %s2741_s29 }
0x1244   : > { %s2728_s30 = scalar_lea.sflag [#allocation6], %s4595_s14  ;;  %s3894_s8 = scalar_lea.vmem %s2742_s29, 128 }
0x1245   : > { %p3895_p7 = scmp.ne.s32.totalorder %s2742_s29, %s3894_s8  ;;  %s4058_s25 = smov [#allocation18]  }
0x1246   : > { %s3898_s21 = sshll.u32 %s4058_s25, 4  ;;  %s3899_s21 = int_to_ptr.vmem [resolvable:$false] %s3898_s21 }
0x1247   : > { %s3900_s20 = scalar_lea.vmem %s3899_s21, 256  ;;  %p3901_p8 = scmp.lt.s32.totalorder %s2742_s29, %s3899_s21 }
0x1248   : > { %s3179_s18 = sshll.u32 %s5156_s5, 7  ;;  %p5159_p11 = scmp.ne.s32.totalorder %s5157_s28, 0 }
0x1249   : > { %s4950_s12 = scalar_lea.hbm %s5158_s10, %s3179_s18  ;;  %p3902_p13 = scmp.lt.s32.totalorder %s3900_s20, %s3894_s8 }
0x124a   : > { %p3896_p9 = pnand %p3895_p7, %p5159_p11 }
0x124b   : > { %p3903_p3 = por %p3902_p13, %p3901_p8 }
0x124c   : > { %p3897_p4 = pneg %p3896_p9 }
0x124e   : > { %p3904_p2 = pnand %p3903_p3, %p3897_p4 }
0x1250   : > { %3907 = shalt.err (!%p3904_p2)
}
0x1251   : > { %s3908_s14 = scalar_lea.hbm %s4950_s12, 128  ;;  %s3912_s23 = scalar_lea.hbm %s5158_s10, 256 }
0x1252   : > { %p3909_p5 = scmp.ne.s32.totalorder %s4950_s12, %s3908_s14  ;;  %p3913_p12 = scmp.lt.u32.totalorder %s4950_s12, %s5158_s10 }
0x1253   : > { %p3914_p10 = scmp.lt.u32.totalorder %s3912_s23, %s3908_s14  ;;  %p3916_p7 = scmp.lt.u32.totalorder %s3908_s14, %s4950_s12 }
0x1254   : > { %p3910_p1 = pnand %p3909_p5, %p5159_p11 }
0x1255   : > { %p3915_p0 = por %p3914_p10, %p3913_p12 }
0x1256   : > { %p3911_p6 = pneg %p3910_p1 }
0x1257   : > { %p3917_p9 = por %p3916_p7, %p3915_p0 }
0x1259   : > { %p3918_p4 = pnand %p3917_p9, %p3911_p6 }
0x125b   : > { %3921 = shalt.err (!%p3918_p4)
}
0x125c   : > { %3363 = dma.vmem_to_hbm [thread:$0]  (%p5159_p11), %s2742_s29, 128, %s4950_s12, %s2728_s30  }
0x125d PF: > { %s5160_s11 = sld [smem:[#allocation35_spill]]  ;;  %s5161_s22 = sld [smem:[#allocation28_spill]] }
0x125e   : > { %s5162_s26 = sld [smem:[#allocation44_spill]] }
0x1263   : > { %p3395_p8 = scmp.ge.s32.totalorder %s5160_s11, 2  ;;  %s2753_s3 = sand.u32 1, %s5161_s22  }
0x1264   : > { %p5163_p13 = scmp.ne.s32.totalorder %s5162_s26, 0  ;;  %s2754_s6 = scalar_lea.sflag [#allocation6], %s2753_s3 }
0x1266   : > { %p3391_p3 = pnand %p3395_p8, %p5163_p13 }
0x1268   : > { %3991 = dma.done.wait (!%p3391_p3), %s2754_s6, 128  }
0x1269   : > { %3993 = vsyncadd (!%p3391_p3), %s2754_s6, 4294967168  ;;  %s44_s0 = sadd.s32 1, %s5160_s11   ;;  %s5164_s21 = sld [smem:[#allocation26_spill]] }
0x126a   : > { %p41_p2 = scmp.ge.s32.totalorder %s44_s0, 6   ;;  %s5165_s22 = sld [smem:[#allocation27_spill]] }
0x126b   : > { %s5166_s23 = sld [smem:[#allocation40_spill]]  ;;  %s5167_s24 = sld [smem:[#allocation29_spill]] }
0x126c   : > { %s5168_s25 = sld [smem:[#allocation30_spill]]  ;;  %s5169_s26 = sld [smem:[#allocation41_spill]] }
0x126d   : > { %s5170_s27 = sld [smem:[#allocation33_spill]]  ;;  %s5171_s28 = sld [smem:[#allocation34_spill]] }
0x126e   : > { %s5172_s29 = sld [smem:[#allocation37_spill]]  ;;  %s5173_s30 = sld [smem:[#allocation38_spill]] }
0x126f   :  { %43 = sbr.rel (!%p41_p2) target bundleno = 35 (0x23), region = 240 }
0x1276   :  { %2759 = vsyncpa [#allocation5], 1 }
0x1277   :  { %2761 = vsyncpa [#allocation5 + $0x1], 1 }
0x1278   :  { %2762 = vsyncpa [#allocation8], 1 }
0x1279   :  { %2764 = vsyncpa [#allocation8 + $0x1], 1 }
0x127a   :  { %2765 = vsyncpa [#allocation11], 1 }
0x127b   :  { %2767 = vsyncpa [#allocation11 + $0x1], 1 }
0x127c   :  { %2768 = vsyncpa [#allocation14], 1 }
0x127d   :  { %2770 = vsyncpa [#allocation14 + $0x1], 1 }
0x127e   :  { %2771 = vsyncpa [#allocation17], 1 }
0x127f   :  { %2773 = vsyncpa [#allocation17 + $0x1], 1 }
0x1280   :  { %2774 = vsyncpa [#allocation6], 1 }
0x1281   :  { %2776 = vsyncpa [#allocation6 + $0x1], 1 }

</bundles_post_ra>
